<compile_context>
chip_gen: v7x
topology: tpu7x:2x2x1
jax: 0.10.0
libtpu: 0.0.40
codegen_flags: <defaults>
</compile_context>

<pallas_src>
import functools
import math

import jax
import jax.numpy as jnp
from jax.experimental import pallas as pl
from jax.experimental.pallas import tpu as pltpu

GPT_EOS = 50256
GPT_PAD = 50256
LN_EPS = 1e-5
NEG_INF = -1e10

# The PyTorch decoder source references an undefined DO_IMPROVED_SELF_ATTENTION
# global; we implement the classic post-LayerNorm (False) branch.
DO_IMPROVED_SELF_ATTENTION = False
# TODO(synk): pre-LN (DO_IMPROVED_SELF_ATTENTION=True) branch not implemented.


# ---------------------------------------------------------------------------
# Small helpers
# ---------------------------------------------------------------------------

def _round_up(x, m):
    return ((x + m - 1) // m) * m


def _divisor_tile(dim, target, quantum):
    """Largest multiple-of-`quantum` divisor of `dim` that is <= target.

    Falls back to `dim` (single full block) only when `dim` is not a multiple
    of `quantum` (callers pad to the quantum first where that matters)."""
    t = min((target // quantum) * quantum, dim)
    t = max(t, quantum)
    while t > quantum and dim % t:
        t -= quantum
    return t if (t > 0 and dim % t == 0) else dim


def _vmem_limit(block_bytes):
    """Explicit scoped-VMEM budget: 3x the static block footprint, clamped."""
    return int(min(max(3 * int(block_bytes), 16 * 1024 * 1024), 64 * 1024 * 1024))


@functools.lru_cache(maxsize=None)
def _buffered_supported():
    """Probe whether pipeline_mode=pl.Buffered(1) is accepted by this backend."""
    try:
        def _probe(x_ref, o_ref):
            o_ref[...] = x_ref[...] + 1.0

        x = jnp.zeros((8, 128), jnp.float32)
        out = pl.pallas_call(
            _probe,
            grid=(2,),
            in_specs=[pl.BlockSpec((8, 128), lambda i: (0, 0),
                                   pipeline_mode=pl.Buffered(1))],
            out_specs=pl.BlockSpec((8, 128), lambda i: (i, 0)),
            out_shape=jax.ShapeDtypeStruct((16, 128), jnp.float32),
        )(x)
        jax.block_until_ready(out)
        return True
    except Exception:
        return False


def _const_spec(shape):
    """BlockSpec for a grid-constant (weight/bias/LN) operand.

    Uses single buffering when the installed Pallas supports pipeline_mode,
    saving a duplicate VMEM buffer per weight tensor."""
    rank = len(shape)
    index_map = lambda *_: (0,) * rank
    if _buffered_supported():
        return pl.BlockSpec(shape, index_map, pipeline_mode=pl.Buffered(1))
    return pl.BlockSpec(shape, index_map)


# ---------------------------------------------------------------------------
# In-kernel helpers
# ---------------------------------------------------------------------------

def _layernorm(y, g, b):
    mean = jnp.mean(y, axis=-1, keepdims=True)
    var = jnp.mean(jnp.square(y - mean), axis=-1, keepdims=True)
    return (y - mean) * jax.lax.rsqrt(var + LN_EPS) * g + b


def _softmax_rows(energy):
    emax = jnp.max(energy, axis=-1, keepdims=True)
    p = jnp.exp(energy - emax)
    denom = jnp.sum(p, axis=-1, keepdims=True)
    return p * pl.reciprocal(denom, approx=True)


# ---------------------------------------------------------------------------
# Pallas kernels
# ---------------------------------------------------------------------------

def _attn_ln_kernel(xq_ref, kv_ref, wq_ref, bq_ref, wkv_ref, bkv_ref,
                    wo_ref, bo_ref, pad_ref, g_ref, beta_ref,
                    o_ref, *opt_attn, nh, hd, tq, inv_scale, causal,
                    return_weights):
    """Fused (self/cross) attention block on one (batch, q-tile) grid cell.

    Q proj (tile) + fused KV proj (full KV source) -> head-batched MHA with
    in-kernel causal mask -> out proj -> +residual -> LayerNorm.  bf16 in/out,
    f32 softmax/LayerNorm math, MXU matmuls bf16 x bf16 -> f32."""
    H = nh * hd
    xq = xq_ref[0]                                  # (tq, H)  bf16
    kv_in = kv_ref[0]                               # (Sk, H) bf16
    Sk = kv_in.shape[0]

    q_all = jnp.dot(xq, wq_ref[...],
                    preferred_element_type=jnp.float32) + bq_ref[...]     # (tq, H)
    kv = jnp.dot(kv_in, wkv_ref[...],
                 preferred_element_type=jnp.float32) + bkv_ref[...]       # (Sk, 2H)

    if nh == 1:
        q = q_all[None].astype(jnp.bfloat16)                              # (1, tq, hd)
        k = kv[:, :H][None].astype(jnp.bfloat16)                          # (1, Sk, hd)
        v = kv[:, H:][None].astype(jnp.bfloat16)
    else:
        q = q_all.reshape(tq, nh, hd).transpose(1, 0, 2).astype(jnp.bfloat16)
        k = kv[:, :H].reshape(Sk, nh, hd).transpose(1, 0, 2).astype(jnp.bfloat16)
        v = kv[:, H:].reshape(Sk, nh, hd).transpose(1, 0, 2).astype(jnp.bfloat16)

    energy = jax.lax.dot_general(q, k, (((2,), (2,)), ((0,), (0,))),
                                 preferred_element_type=jnp.float32)      # (nh,tq,Sk)
    energy = energy * inv_scale + pad_ref[0]        # key-padding bias (1, Sk)

    if causal:
        q0 = pl.program_id(1) * tq
        row = jax.lax.broadcasted_iota(jnp.int32, (tq, Sk), 0) + q0
        col = jax.lax.broadcasted_iota(jnp.int32, (tq, Sk), 1)
        energy = jnp.where((row >= col)[None], energy, NEG_INF)

    attn = _softmax_rows(energy)                    # (nh, tq, Sk) f32
    if return_weights:
        opt_attn[0][0] = attn.astype(jnp.bfloat16)

    ctx = jax.lax.dot_general(attn.astype(jnp.bfloat16), v,
                              (((2,), (1,)), ((0,), (0,))),
                              preferred_element_type=jnp.float32)         # (nh,tq,hd)
    ctx2 = ctx[0] if nh == 1 else ctx.transpose(1, 0, 2).reshape(tq, H)

    out = jnp.dot(ctx2.astype(jnp.bfloat16), wo_ref[...],
                  preferred_element_type=jnp.float32) + bo_ref[...]
    y = xq.astype(jnp.float32) + out
    o_ref[0] = _layernorm(y, g_ref[...], beta_ref[...]).astype(jnp.bfloat16)


def _ffn_ln_kernel(x_ref, w1_ref, b1_ref, w2_ref, b2_ref, g_ref, beta_ref, o_ref):
    """Fused FeedForward (relu) -> +residual -> LayerNorm on a bf16 row tile."""
    x = x_ref[...]                                  # (tm, H) bf16
    h = jnp.dot(x, w1_ref[...],
                preferred_element_type=jnp.float32) + b1_ref[...]
    h = jnp.maximum(h, 0.0)                         # ReLU; dropout = identity
    out = jnp.dot(h.astype(jnp.bfloat16), w2_ref[...],
                  preferred_element_type=jnp.float32) + b2_ref[...]
    y = x.astype(jnp.float32) + out
    o_ref[...] = _layernorm(y, g_ref[...], beta_ref[...]).astype(jnp.bfloat16)


def _linear_kernel(x_ref, w_ref, b_ref, o_ref, acc_ref):
    """Tiled y = x @ w + b with f32 VMEM accumulator over the K grid axis.

    x tiles are already bf16 in HBM (no per-K-step cast / f32 DMA)."""
    @pl.when(pl.program_id(2) == 0)
    def _():
        acc_ref[...] = jnp.zeros_like(acc_ref)

    acc_ref[...] += jnp.dot(x_ref[...], w_ref[...],
                            preferred_element_type=jnp.float32)

    @pl.when(pl.program_id(2) == pl.num_programs(2) - 1)
    def _():
        o_ref[...] = acc_ref[...] + b_ref[...]


# ---------------------------------------------------------------------------
# Wrappers (grids / BlockSpecs)
# ---------------------------------------------------------------------------

def fused_attention_ln(p, x, kv_src, pad_bias, num_heads, *, causal,
                       return_weights):
    """x: [B,Sq,H] bf16 query/residual stream; kv_src: [B,Sk,H] bf16 (x itself
    for self-attention, encoder output for cross-attention);
    pad_bias: [B,1,Sk] f32 additive key-padding bias."""
    B, Sq, H = x.shape
    Sk = kv_src.shape[1]
    assert H % num_heads == 0
    hd = H // num_heads
    tq = _divisor_tile(Sq, 256, 8)
    nq = Sq // tq

    kernel = functools.partial(_attn_ln_kernel, nh=num_heads, hd=hd, tq=tq,
                               inv_scale=1.0 / math.sqrt(hd), causal=causal,
                               return_weights=return_weights)

    in_specs = [
        pl.BlockSpec((1, tq, H), lambda b, qi: (b, qi, 0)),    # query tile
        pl.BlockSpec((1, Sk, H), lambda b, qi: (b, 0, 0)),     # KV source (full)
        _const_spec((H, H)),                                   # wq
        _const_spec((1, H)),                                   # bq
        _const_spec((H, 2 * H)),                               # wkv (fused K|V)
        _const_spec((1, 2 * H)),                               # bkv
        _const_spec((H, H)),                                   # wo
        _const_spec((1, H)),                                   # bo
        pl.BlockSpec((1, 1, Sk), lambda b, qi: (b, 0, 0)),     # key-pad bias
        _const_spec((1, H)),                                   # ln gamma
        _const_spec((1, H)),                                   # ln beta
    ]
    if return_weights:
        out_shape = (jax.ShapeDtypeStruct((B, Sq, H), jnp.bfloat16),
                     jax.ShapeDtypeStruct((B, num_heads, Sq, Sk), jnp.bfloat16))
        out_specs = (pl.BlockSpec((1, tq, H), lambda b, qi: (b, qi, 0)),
                     pl.BlockSpec((1, num_heads, tq, Sk),
                                  lambda b, qi: (b, 0, qi, 0)))
    else:
        out_shape = jax.ShapeDtypeStruct((B, Sq, H), jnp.bfloat16)
        out_specs = pl.BlockSpec((1, tq, H), lambda b, qi: (b, qi, 0))

    blk_bytes = (2 * (2 * tq * H + Sk * H)                     # bf16 activations
                 + 2 * (4 * H * H) + 4 * (8 * H + Sk)          # weights + biases
                 + 4 * (3 * tq * H + 2 * Sk * H + 3 * num_heads * tq * Sk))
    if return_weights:
        blk_bytes += 2 * num_heads * tq * Sk

    flops = (2 * B * Sq * H * H + 2 * B * Sk * H * 2 * H
             + 4 * B * num_heads * Sq * Sk * hd + 2 * B * Sq * H * H)
    bytes_acc = (2 * (2 * B * Sq * H + B * Sk * H) + 4 * B * Sk + 2 * 4 * H * H)

    res = pl.pallas_call(
        kernel,
        grid=(B, nq),
        in_specs=in_specs,
        out_specs=out_specs,
        out_shape=out_shape,
        compiler_params=pltpu.CompilerParams(
            dimension_semantics=("parallel", "parallel"),
            vmem_limit_bytes=_vmem_limit(blk_bytes)),
        cost_estimate=pl.CostEstimate(
            flops=int(flops),
            transcendentals=int(B * num_heads * Sq * Sk),
            bytes_accessed=int(bytes_acc)),
    )(x, kv_src, p["wq"], p["bq"], p["wkv"], p["bkv"], p["wo"], p["bo"],
      pad_bias, p["ln_g"], p["ln_b"])

    if return_weights:
        return res[0], res[1]
    return res, None


def fused_ffn_ln(p, x):
    lead = x.shape[:-1]
    H = x.shape[-1]
    F = p["w1"].shape[1]
    x2 = x.reshape(-1, H)
    M = x2.shape[0]
    Mp = _round_up(M, 8)
    if Mp != M:
        x2 = jnp.pad(x2, ((0, Mp - M), (0, 0)))
    tm = _divisor_tile(Mp, 512, 8)

    blk_bytes = 2 * (2 * tm * H) + 2 * (2 * H * F) + 4 * (tm * F + tm * H) + 4 * (F + 3 * H)
    out = pl.pallas_call(
        _ffn_ln_kernel,
        grid=(Mp // tm,),
        in_specs=[
            pl.BlockSpec((tm, H), lambda i: (i, 0)),
            _const_spec((H, F)), _const_spec((1, F)),
            _const_spec((F, H)), _const_spec((1, H)),
            _const_spec((1, H)), _const_spec((1, H)),
        ],
        out_specs=pl.BlockSpec((tm, H), lambda i: (i, 0)),
        out_shape=jax.ShapeDtypeStruct((Mp, H), jnp.bfloat16),
        compiler_params=pltpu.CompilerParams(
            dimension_semantics=("parallel",),
            vmem_limit_bytes=_vmem_limit(blk_bytes)),
        cost_estimate=pl.CostEstimate(flops=int(4 * M * H * F), transcendentals=0,
                                      bytes_accessed=int(2 * 2 * M * H + 2 * 2 * H * F)),
    )(x2, p["w1"], p["b1"], p["w2"], p["b2"], p["ln_g"], p["ln_b"])
    return out[:M].reshape(*lead, H)


def linear(x, w, b):
    """y = x @ w + b.  x: [..., K] bf16, w: [K, N] bf16 (pre-transposed), b: [1, N] f32.
    M/N/K are zero-padded to tileable multiples (no full-dim fallback blocks)."""
    lead = x.shape[:-1]
    K = x.shape[-1]
    N = w.shape[1]
    x2 = x.reshape(-1, K).astype(jnp.bfloat16)
    M = x2.shape[0]

    Mp = _round_up(M, 8)
    Kp = K if K <= 512 else _round_up(K, 128)
    Np = _round_up(N, 128)
    if Mp != M or Kp != K:
        x2 = jnp.pad(x2, ((0, Mp - M), (0, Kp - K)))
    w2 = w if (Kp == K and Np == N) else jnp.pad(w, ((0, Kp - K), (0, Np - N)))
    b2 = b if Np == N else jnp.pad(b, ((0, 0), (0, Np - N)))

    tm = _divisor_tile(Mp, 256, 8)
    tn = _divisor_tile(Np, 256, 128)
    tk = Kp if Kp <= 512 else _divisor_tile(Kp, 512, 128)

    blk_bytes = 2 * (tm * tk + tk * tn) + 4 * (tn + 2 * tm * tn)
    out = pl.pallas_call(
        _linear_kernel,
        grid=(Mp // tm, Np // tn, Kp // tk),
        in_specs=[
            pl.BlockSpec((tm, tk), lambda i, j, k: (i, k)),
            pl.BlockSpec((tk, tn), lambda i, j, k: (k, j)),
            pl.BlockSpec((1, tn), lambda i, j, k: (0, j)),
        ],
        out_specs=pl.BlockSpec((tm, tn), lambda i, j, k: (i, j)),
        out_shape=jax.ShapeDtypeStruct((Mp, Np), jnp.float32),
        scratch_shapes=[pltpu.VMEM((tm, tn), jnp.float32)],
        compiler_params=pltpu.CompilerParams(
            dimension_semantics=("parallel", "parallel", "arbitrary"),
            vmem_limit_bytes=_vmem_limit(blk_bytes)),
        cost_estimate=pl.CostEstimate(
            flops=int(2 * M * N * K), transcendentals=0,
            bytes_accessed=int(2 * M * K + 2 * K * N + 4 * M * N)),
    )(x2, w2, b2)
    return out[:M, :N].reshape(*lead, N)


# ---------------------------------------------------------------------------
# Mask construction (AttentionTransformer.inputMask / targetMask semantics)
# Only compact key-padding biases live in HBM; the causal (tril) part of the
# target mask is generated in-kernel via broadcasted_iota.
# ---------------------------------------------------------------------------

def input_pad_bias(input_ids):
    """(input != EOS) key-padding mask as an additive bias, shape [B, 1, S_in]."""
    keep = input_ids != GPT_EOS
    return jnp.where(keep, 0.0, NEG_INF).astype(jnp.float32)[:, None, :]


def target_pad_bias(target_ids):
    """(target != PAD) key-padding part of targetMask, shape [B, 1, S_t]."""
    keep = target_ids != GPT_PAD
    return jnp.where(keep, 0.0, NEG_INF).astype(jnp.float32)[:, None, :]


# ---------------------------------------------------------------------------
# Model forward (glue in plain JAX: embeddings + layer loop)
# ---------------------------------------------------------------------------

def _embed(p, ids):
    H = p["token_emb"].shape[1]
    S = ids.shape[1]
    tok = jnp.take(p["token_emb"], ids, axis=0) * math.sqrt(H)
    pos = p["pos_emb"][:S][None, :, :]
    return (tok + pos).astype(jnp.bfloat16)        # bf16 residual stream


def encoder_forward(p, input_ids, in_bias, num_heads):
    x = _embed(p, input_ids)
    for lp in p["layers"]:
        x, _ = fused_attention_ln(lp["attn"], x, x, in_bias, num_heads,
                                  causal=False, return_weights=False)
        x = fused_ffn_ln(lp["ffn"], x)
    return x


def decoder_forward(p, target_ids, encoded, in_bias, tgt_bias, num_heads):
    x = _embed(p, target_ids)
    attention = None
    n_layers = len(p["layers"])
    for li, lp in enumerate(p["layers"]):
        # post-LN self-attention (DO_IMPROVED_SELF_ATTENTION == False branch)
        x, _ = fused_attention_ln(lp["self_attn"], x, x, tgt_bias, num_heads,
                                  causal=True, return_weights=False)
        x, attn_w = fused_attention_ln(lp["enc_attn"], x, encoded, in_bias,
                                       num_heads, causal=False,
                                       return_weights=(li == n_layers - 1))
        if attn_w is not None:
            attention = attn_w
        x = fused_ffn_ln(lp["ffn"], x)
    output = linear(x, p["out_w"], p["out_b"])
    return output, attention


def attention_transformer_forward(params, input_ids, target_ids, *, num_heads=1):
    in_bias = input_pad_bias(input_ids)     # [B, 1, S_in]
    tgt_bias = target_pad_bias(target_ids)  # [B, 1, S_t]  (causal part in-kernel)
    encoded = encoder_forward(params["encoder"], input_ids, in_bias, num_heads)
    output, attention = decoder_forward(params["decoder"], target_ids, encoded,
                                        in_bias, tgt_bias, num_heads)
    return output, attention


# ---------------------------------------------------------------------------
# Deterministic parameter init (PyTorch-style uniform bounds; weights stored
# pre-transposed [in, out] and in bf16 for the MXU path)
# ---------------------------------------------------------------------------

def _init_dense(key, in_f, out_f):
    k1, k2 = jax.random.split(key)
    bound = 1.0 / math.sqrt(in_f)
    w = jax.random.uniform(k1, (in_f, out_f), jnp.float32, -bound, bound)
    b = jax.random.uniform(k2, (1, out_f), jnp.float32, -bound, bound)
    return w.astype(jnp.bfloat16), b


def _ln_params(hidden):
    return dict(ln_g=jnp.ones((1, hidden), jnp.float32),
                ln_b=jnp.zeros((1, hidden), jnp.float32))


def _init_attn(key, hidden):
    k1, k2, k3 = jax.random.split(key, 3)
    wq, bq = _init_dense(k1, hidden, hidden)
    wkv, bkv = _init_dense(k2, hidden, 2 * hidden)
    wo, bo = _init_dense(k3, hidden, hidden)
    return dict(wq=wq, bq=bq, wkv=wkv, bkv=bkv, wo=wo, bo=bo, **_ln_params(hidden))


def _init_ffn(key, hidden):
    k1, k2 = jax.random.split(key)
    w1, b1 = _init_dense(k1, hidden, hidden)   # FeedForward: hidden -> hidden
    w2, b2 = _init_dense(k2, hidden, hidden)
    return dict(w1=w1, b1=b1, w2=w2, b2=b2, **_ln_params(hidden))


def _init_encoder_layer(key, hidden):
    k1, k2 = jax.random.split(key)
    return dict(attn=_init_attn(k1, hidden), ffn=_init_ffn(k2, hidden))


def _init_decoder_layer(key, hidden):
    k1, k2, k3 = jax.random.split(key, 3)
    return dict(self_attn=_init_attn(k1, hidden),
                enc_attn=_init_attn(k2, hidden),
                ffn=_init_ffn(k3, hidden))


def init_params(key, input_vocab, output_dim, hidden, enc_layers, dec_layers,
                max_len=256):
    ke, kd, kte, kpe, ktd, kpd, ko = jax.random.split(key, 7)
    out_w, out_b = _init_dense(ko, hidden, output_dim)
    encoder = dict(
        token_emb=jax.random.normal(kte, (input_vocab, hidden), jnp.float32),
        pos_emb=jax.random.normal(kpe, (max_len, hidden), jnp.float32),
        layers=[_init_encoder_layer(k, hidden)
                for k in jax.random.split(ke, enc_layers)],
    )
    decoder = dict(
        token_emb=jax.random.normal(ktd, (output_dim, hidden), jnp.float32),
        pos_emb=jax.random.normal(kpd, (max_len, hidden), jnp.float32),
        layers=[_init_decoder_layer(k, hidden)
                for k in jax.random.split(kd, dec_layers)],
        out_w=out_w, out_b=out_b,
    )
    return dict(encoder=encoder, decoder=decoder)


# ---------------------------------------------------------------------------

if __name__ == "__main__":
    B, S_IN, S_TGT = 2, 8, 8
    HIDDEN, OUTPUT_DIM, INPUT_VOCAB = 32, 16, 32
    ENC_LAYERS, DEC_LAYERS, NUM_HEADS = 2, 2, 1

    # Probe Buffered(1) support eagerly (cached) before tracing the model.
    _buffered_supported()

    root = jax.random.PRNGKey(0)
    k_params, k_in, k_tgt = jax.random.split(root, 3)

    params = init_params(k_params, INPUT_VOCAB, OUTPUT_DIM, HIDDEN,
                         ENC_LAYERS, DEC_LAYERS)
    input_ids = jax.random.randint(k_in, (B, S_IN), 0, INPUT_VOCAB, dtype=jnp.int32)
    target_ids = jax.random.randint(k_tgt, (B, S_TGT), 0, OUTPUT_DIM, dtype=jnp.int32)

    fwd = jax.jit(functools.partial(attention_transformer_forward,
                                    num_heads=NUM_HEADS))
    output, attention = fwd(params, input_ids, target_ids)
    jax.block_until_ready((output, attention))

    assert output.shape == (B, S_TGT, OUTPUT_DIM)
    assert output.dtype == jnp.float32
    assert attention.shape == (B, NUM_HEADS, S_TGT, S_IN)
    assert bool(jnp.all(jnp.isfinite(output)))
    assert bool(jnp.all(jnp.isfinite(attention.astype(jnp.float32))))
    print("KERNEL_OK")
</pallas_src>

<mosaic_0001>
module attributes {stable_mosaic.version = 11 : i64} {
  func.func @_probe(%arg0: i32, %arg1: memref<8x128xf32, #tpu.memory_space<vmem>>, %arg2: memref<8x128xf32, #tpu.memory_space<vmem>>) attributes {dimension_semantics = [#tpu.dimension_semantics<arbitrary>], iteration_bounds = array<i64: 2>, scalar_prefetch = 0 : i64, scratch_operands = 0 : i64, tpu.core_type = #tpu.core_type<tc>, window_params = [{pipeline_mode = #tpu.pipeline_mode<synchronous>, transform_indices = @transform_0, window_bounds = array<i64: 8, 128>}, {transform_indices = @transform_1, window_bounds = array<i64: 8, 128>}]} {
    %c0 = arith.constant 0 : index
    %c0_0 = arith.constant 0 : index
    %0 = vector.load %arg1[%c0, %c0_0] : memref<8x128xf32, #tpu.memory_space<vmem>>, vector<8x128xf32>
    %cst = arith.constant 1.000000e+00 : f32
    %1 = vector.broadcast %cst : f32 to vector<8x128xf32>
    %2 = arith.addf %0, %1 : vector<8x128xf32>
    %c0_1 = arith.constant 0 : index
    %c0_2 = arith.constant 0 : index
    %3 = vector.load %arg2[%c0_1, %c0_2] : memref<8x128xf32, #tpu.memory_space<vmem>>, vector<8x128xf32>
    tpu.vector_store %arg2[%c0_1, %c0_2], %2 {strides = array<i32>} : memref<8x128xf32, #tpu.memory_space<vmem>>, vector<8x128xf32>,
    return
  }
  func.func @transform_0(%arg0: i32) -> (i32, i32) {
    %c0_i32 = arith.constant 0 : i32
    %c0_i32_0 = arith.constant 0 : i32
    %c0_i32_1 = arith.constant 0 : i32
    return %c0_i32, %c0_i32_0 : i32, i32
  }
  func.func @transform_1(%arg0: i32) -> (i32, i32) {
    %c0_i32 = arith.constant 0 : i32
    %c0_i32_0 = arith.constant 0 : i32
    return %arg0, %c0_i32 : i32, i32
  }
}

module attributes {stable_mosaic.version = 11 : i64} {
  func.func @_attn_ln_kernel(%arg0: i32, %arg1: i32, %arg2: memref<1x8x32xbf16, #tpu.memory_space<vmem>>, %arg3: memref<1x8x32xbf16, #tpu.memory_space<vmem>>, %arg4: memref<32x32xbf16, #tpu.memory_space<vmem>>, %arg5: memref<1x32xf32, #tpu.memory_space<vmem>>, %arg6: memref<32x64xbf16, #tpu.memory_space<vmem>>, %arg7: memref<1x64xf32, #tpu.memory_space<vmem>>, %arg8: memref<32x32xbf16, #tpu.memory_space<vmem>>, %arg9: memref<1x32xf32, #tpu.memory_space<vmem>>, %arg10: memref<1x1x8xf32, #tpu.memory_space<vmem>>, %arg11: memref<1x32xf32, #tpu.memory_space<vmem>>, %arg12: memref<1x32xf32, #tpu.memory_space<vmem>>, %arg13: memref<1x8x32xbf16, #tpu.memory_space<vmem>>, %arg14: memref<1x1x8x8xbf16, #tpu.memory_space<vmem>>) attributes {dimension_semantics = [#tpu.dimension_semantics<parallel>, #tpu.dimension_semantics<parallel>], iteration_bounds = array<i64: 2, 1>, scalar_prefetch = 0 : i64, scratch_operands = 0 : i64, tpu.core_type = #tpu.core_type<tc>, window_params = [{transform_indices = @transform_0, window_bounds = array<i64: 1, 8, 32>}, {transform_indices = @transform_1, window_bounds = array<i64: 1, 8, 32>}, {pipeline_mode = #tpu.pipeline_mode<synchronous>, transform_indices = @transform_2, window_bounds = array<i64: 32, 32>}, {pipeline_mode = #tpu.pipeline_mode<synchronous>, transform_indices = @transform_3, window_bounds = array<i64: 1, 32>}, {pipeline_mode = #tpu.pipeline_mode<synchronous>, transform_indices = @transform_4, window_bounds = array<i64: 32, 64>}, {pipeline_mode = #tpu.pipeline_mode<synchronous>, transform_indices = @transform_5, window_bounds = array<i64: 1, 64>}, {pipeline_mode = #tpu.pipeline_mode<synchronous>, transform_indices = @transform_6, window_bounds = array<i64: 32, 32>}, {pipeline_mode = #tpu.pipeline_mode<synchronous>, transform_indices = @transform_7, window_bounds = array<i64: 1, 32>}, {transform_indices = @transform_8, window_bounds = array<i64: 1, 1, 8>}, {pipeline_mode = #tpu.pipeline_mode<synchronous>, transform_indices = @transform_9, window_bounds = array<i64: 1, 32>}, {pipeline_mode = #tpu.pipeline_mode<synchronous>, transform_indices = @transform_10, window_bounds = array<i64: 1, 32>}, {transform_indices = @transform_11, window_bounds = array<i64: 1, 8, 32>}, {transform_indices = @transform_12, window_bounds = array<i64: 1, 1, 8, 8>}]} {
    %c0 = arith.constant 0 : index
    %c0_0 = arith.constant 0 : index
    %c0_1 = arith.constant 0 : index
    %0 = vector.load %arg2[%c0, %c0_0, %c0_1] : memref<1x8x32xbf16, #tpu.memory_space<vmem>>, vector<1x8x32xbf16>
    %1 = vector.shape_cast %0 : vector<1x8x32xbf16> to vector<8x32xbf16>
    %c0_2 = arith.constant 0 : index
    %c0_3 = arith.constant 0 : index
    %c0_4 = arith.constant 0 : index
    %2 = vector.load %arg3[%c0_2, %c0_3, %c0_4] : memref<1x8x32xbf16, #tpu.memory_space<vmem>>, vector<1x8x32xbf16>
    %3 = vector.shape_cast %2 : vector<1x8x32xbf16> to vector<8x32xbf16>
    %c0_5 = arith.constant 0 : index
    %c0_6 = arith.constant 0 : index
    %4 = vector.load %arg4[%c0_5, %c0_6] : memref<32x32xbf16, #tpu.memory_space<vmem>>, vector<32x32xbf16>
    %cst = arith.constant dense<0.000000e+00> : vector<8x32xf32>
    %5 = tpu.matmul %1, %4, %cst {dimension_numbers = #tpu.dot_dimension_numbers<[1], [0], [0], [1], [0, 0, 1, 1], [], []>} : vector<8x32xbf16>, vector<32x32xbf16>, vector<8x32xf32> -> vector<8x32xf32>
    %c0_7 = arith.constant 0 : index
    %c0_8 = arith.constant 0 : index
    %6 = vector.load %arg5[%c0_7, %c0_8] : memref<1x32xf32, #tpu.memory_space<vmem>>, vector<1x32xf32>
    %7 = vector.broadcast %6 : vector<1x32xf32> to vector<8x32xf32>
    %8 = arith.addf %5, %7 : vector<8x32xf32>
    %c0_9 = arith.constant 0 : index
    %c0_10 = arith.constant 0 : index
    %9 = vector.load %arg6[%c0_9, %c0_10] : memref<32x64xbf16, #tpu.memory_space<vmem>>, vector<32x64xbf16>
    %cst_11 = arith.constant dense<0.000000e+00> : vector<8x64xf32>
    %10 = tpu.matmul %3, %9, %cst_11 {dimension_numbers = #tpu.dot_dimension_numbers<[1], [0], [0], [1], [0, 0, 1, 1], [], []>} : vector<8x32xbf16>, vector<32x64xbf16>, vector<8x64xf32> -> vector<8x64xf32>
    %c0_12 = arith.constant 0 : index
    %c0_13 = arith.constant 0 : index
    %11 = vector.load %arg7[%c0_12, %c0_13] : memref<1x64xf32, #tpu.memory_space<vmem>>, vector<1x64xf32>
    %12 = vector.broadcast %11 : vector<1x64xf32> to vector<8x64xf32>
    %13 = arith.addf %10, %12 : vector<8x64xf32>
    %14 = vector.shape_cast %8 : vector<8x32xf32> to vector<1x8x32xf32>
    %15 = arith.truncf %14 : vector<1x8x32xf32> to vector<1x8x32xbf16>
    %16 = vector.extract_strided_slice %13 {offsets = [0, 0], sizes = [8, 32], strides = [1, 1]} : vector<8x64xf32> to vector<8x32xf32>
    %17 = vector.shape_cast %16 : vector<8x32xf32> to vector<1x8x32xf32>
    %18 = arith.truncf %17 : vector<1x8x32xf32> to vector<1x8x32xbf16>
    %19 = vector.extract_strided_slice %13 {offsets = [0, 32], sizes = [8, 32], strides = [1, 1]} : vector<8x64xf32> to vector<8x32xf32>
    %20 = vector.shape_cast %19 : vector<8x32xf32> to vector<1x8x32xf32>
    %21 = arith.truncf %20 : vector<1x8x32xf32> to vector<1x8x32xbf16>
    %cst_14 = arith.constant dense<0.000000e+00> : vector<1x8x8xf32>
    %22 = tpu.matmul %15, %18, %cst_14 {dimension_numbers = #tpu.dot_dimension_numbers<[2], [2], [1], [1], [0, 0, 0, 1, 1, 1], [0], [0]>} : vector<1x8x32xbf16>, vector<1x8x32xbf16>, vector<1x8x8xf32> -> vector<1x8x8xf32>
    %cst_15 = arith.constant 0.176776692 : f32
    %23 = vector.broadcast %cst_15 : f32 to vector<1x8x8xf32>
    %24 = arith.mulf %22, %23 : vector<1x8x8xf32>
    %c0_16 = arith.constant 0 : index
    %c0_17 = arith.constant 0 : index
    %c0_18 = arith.constant 0 : index
    %25 = vector.load %arg10[%c0_16, %c0_17, %c0_18] : memref<1x1x8xf32, #tpu.memory_space<vmem>>, vector<1x1x8xf32>
    %26 = vector.shape_cast %25 : vector<1x1x8xf32> to vector<1x8xf32>
    %27 = vector.shape_cast %26 : vector<1x8xf32> to vector<1x1x8xf32>
    %28 = vector.broadcast %27 : vector<1x1x8xf32> to vector<1x8x8xf32>
    %29 = arith.addf %24, %28 : vector<1x8x8xf32>
    %cst_19 = arith.constant dense<0xFF800000> : vector<1x8xf32>
    %30 = vector.multi_reduction <maximumf>, %29, %cst_19 [2] : vector<1x8x8xf32> to vector<1x8xf32>
    %31 = vector.shape_cast %30 : vector<1x8xf32> to vector<1x8x1xf32>
    %32 = vector.broadcast %31 : vector<1x8x1xf32> to vector<1x8x8xf32>
    %33 = arith.subf %29, %32 : vector<1x8x8xf32>
    %34 = math.exp %33 : vector<1x8x8xf32>
    %cst_20 = arith.constant dense<0.000000e+00> : vector<1x8xf32>
    %35 = vector.multi_reduction <add>, %34, %cst_20 [2] : vector<1x8x8xf32> to vector<1x8xf32>
    %36 = vector.shape_cast %35 : vector<1x8xf32> to vector<1x8x1xf32>
    %37 = tpu.reciprocal %36 {approx = true} : vector<1x8x1xf32> -> vector<1x8x1xf32>
    %38 = vector.broadcast %37 : vector<1x8x1xf32> to vector<1x8x8xf32>
    %39 = arith.mulf %34, %38 : vector<1x8x8xf32>
    %40 = arith.truncf %39 : vector<1x8x8xf32> to vector<1x8x8xbf16>
    %c0_21 = arith.constant 0 : index
    %c0_22 = arith.constant 0 : index
    %c0_23 = arith.constant 0 : index
    %c0_24 = arith.constant 0 : index
    %41 = vector.load %arg14[%c0_21, %c0_22, %c0_23, %c0_24] : memref<1x1x8x8xbf16, #tpu.memory_space<vmem>>, vector<1x1x8x8xbf16>
    %42 = vector.shape_cast %41 : vector<1x1x8x8xbf16> to vector<1x8x8xbf16>
    %43 = vector.shape_cast %40 : vector<1x8x8xbf16> to vector<1x1x8x8xbf16>
    tpu.vector_store %arg14[%c0_21, %c0_22, %c0_23, %c0_24], %43 {strides = array<i32>} : memref<1x1x8x8xbf16, #tpu.memory_space<vmem>>, vector<1x1x8x8xbf16>,
    %44 = arith.truncf %39 : vector<1x8x8xf32> to vector<1x8x8xbf16>
    %cst_25 = arith.constant dense<0.000000e+00> : vector<1x8x32xf32>
    %45 = tpu.matmul %44, %21, %cst_25 {dimension_numbers = #tpu.dot_dimension_numbers<[2], [1], [1], [2], [0, 0, 0, 1, 1, 2], [0], [0]>} : vector<1x8x8xbf16>, vector<1x8x32xbf16>, vector<1x8x32xf32> -> vector<1x8x32xf32>
    %46 = vector.shape_cast %45 : vector<1x8x32xf32> to vector<8x32xf32>
    %47 = arith.truncf %46 : vector<8x32xf32> to vector<8x32xbf16>
    %c0_26 = arith.constant 0 : index
    %c0_27 = arith.constant 0 : index
    %48 = vector.load %arg8[%c0_26, %c0_27] : memref<32x32xbf16, #tpu.memory_space<vmem>>, vector<32x32xbf16>
    %cst_28 = arith.constant dense<0.000000e+00> : vector<8x32xf32>
    %49 = tpu.matmul %47, %48, %cst_28 {dimension_numbers = #tpu.dot_dimension_numbers<[1], [0], [0], [1], [0, 0, 1, 1], [], []>} : vector<8x32xbf16>, vector<32x32xbf16>, vector<8x32xf32> -> vector<8x32xf32>
    %c0_29 = arith.constant 0 : index
    %c0_30 = arith.constant 0 : index
    %50 = vector.load %arg9[%c0_29, %c0_30] : memref<1x32xf32, #tpu.memory_space<vmem>>, vector<1x32xf32>
    %51 = vector.broadcast %50 : vector<1x32xf32> to vector<8x32xf32>
    %52 = arith.addf %49, %51 : vector<8x32xf32>
    %53 = arith.extf %1 : vector<8x32xbf16> to vector<8x32xf32>
    %54 = arith.addf %53, %52 : vector<8x32xf32>
    %c0_31 = arith.constant 0 : index
    %c0_32 = arith.constant 0 : index
    %55 = vector.load %arg11[%c0_31, %c0_32] : memref<1x32xf32, #tpu.memory_space<vmem>>, vector<1x32xf32>
    %c0_33 = arith.constant 0 : index
    %c0_34 = arith.constant 0 : index
    %56 = vector.load %arg12[%c0_33, %c0_34] : memref<1x32xf32, #tpu.memory_space<vmem>>, vector<1x32xf32>
    %cst_35 = arith.constant dense<0.000000e+00> : vector<8xf32>
    %57 = vector.multi_reduction <add>, %54, %cst_35 [1] : vector<8x32xf32> to vector<8xf32>
    %58 = vector.shape_cast %57 : vector<8xf32> to vector<8x1xf32>
    %cst_36 = arith.constant 3.200000e+01 : f32
    %59 = vector.broadcast %cst_36 : f32 to vector<8x1xf32>
    %60 = arith.divf %58, %59 : vector<8x1xf32>
    %61 = vector.broadcast %60 : vector<8x1xf32> to vector<8x32xf32>
    %62 = arith.subf %54, %61 : vector<8x32xf32>
    %63 = arith.mulf %62, %62 : vector<8x32xf32>
    %cst_37 = arith.constant dense<0.000000e+00> : vector<8xf32>
    %64 = vector.multi_reduction <add>, %63, %cst_37 [1] : vector<8x32xf32> to vector<8xf32>
    %65 = vector.shape_cast %64 : vector<8xf32> to vector<8x1xf32>
    %cst_38 = arith.constant 3.200000e+01 : f32
    %66 = vector.broadcast %cst_38 : f32 to vector<8x1xf32>
    %67 = arith.divf %65, %66 : vector<8x1xf32>
    %68 = vector.broadcast %60 : vector<8x1xf32> to vector<8x32xf32>
    %69 = arith.subf %54, %68 : vector<8x32xf32>
    %cst_39 = arith.constant 9.99999974E-6 : f32
    %70 = vector.broadcast %cst_39 : f32 to vector<8x1xf32>
    %71 = arith.addf %67, %70 : vector<8x1xf32>
    %72 = math.rsqrt %71 : vector<8x1xf32>
    %73 = vector.broadcast %72 : vector<8x1xf32> to vector<8x32xf32>
    %74 = arith.mulf %69, %73 : vector<8x32xf32>
    %75 = vector.broadcast %55 : vector<1x32xf32> to vector<8x32xf32>
    %76 = arith.mulf %74, %75 : vector<8x32xf32>
    %77 = vector.broadcast %56 : vector<1x32xf32> to vector<8x32xf32>
    %78 = arith.addf %76, %77 : vector<8x32xf32>
    %79 = arith.truncf %78 : vector<8x32xf32> to vector<8x32xbf16>
    %c0_40 = arith.constant 0 : index
    %c0_41 = arith.constant 0 : index
    %c0_42 = arith.constant 0 : index
    %80 = vector.load %arg13[%c0_40, %c0_41, %c0_42] : memref<1x8x32xbf16, #tpu.memory_space<vmem>>, vector<1x8x32xbf16>
    %81 = vector.shape_cast %80 : vector<1x8x32xbf16> to vector<8x32xbf16>
    %82 = vector.shape_cast %79 : vector<8x32xbf16> to vector<1x8x32xbf16>
    tpu.vector_store %arg13[%c0_40, %c0_41, %c0_42], %82 {strides = array<i32>} : memref<1x8x32xbf16, #tpu.memory_space<vmem>>, vector<1x8x32xbf16>,
    return
  }
  func.func @transform_0(%arg0: i32, %arg1: i32) -> (i32, i32, i32) {
    %c0_i32 = arith.constant 0 : i32
    %c0_i32_0 = arith.constant 0 : i32
    return %arg0, %arg1, %c0_i32 : i32, i32, i32
  }
  func.func @transform_1(%arg0: i32, %arg1: i32) -> (i32, i32, i32) {
    %c0_i32 = arith.constant 0 : i32
    %c0_i32_0 = arith.constant 0 : i32
    %c0_i32_1 = arith.constant 0 : i32
    return %arg0, %c0_i32, %c0_i32_0 : i32, i32, i32
  }
  func.func @transform_2(%arg0: i32, %arg1: i32) -> (i32, i32) {
    %c0_i32 = arith.constant 0 : i32
    %c0_i32_0 = arith.constant 0 : i32
    %c0_i32_1 = arith.constant 0 : i32
    return %c0_i32, %c0_i32_0 : i32, i32
  }
  func.func @transform_3(%arg0: i32, %arg1: i32) -> (i32, i32) {
    %c0_i32 = arith.constant 0 : i32
    %c0_i32_0 = arith.constant 0 : i32
    %c0_i32_1 = arith.constant 0 : i32
    return %c0_i32, %c0_i32_0 : i32, i32
  }
  func.func @transform_4(%arg0: i32, %arg1: i32) -> (i32, i32) {
    %c0_i32 = arith.constant 0 : i32
    %c0_i32_0 = arith.constant 0 : i32
    %c0_i32_1 = arith.constant 0 : i32
    return %c0_i32, %c0_i32_0 : i32, i32
  }
  func.func @transform_5(%arg0: i32, %arg1: i32) -> (i32, i32) {
    %c0_i32 = arith.constant 0 : i32
    %c0_i32_0 = arith.constant 0 : i32
    %c0_i32_1 = arith.constant 0 : i32
    return %c0_i32, %c0_i32_0 : i32, i32
  }
  func.func @transform_6(%arg0: i32, %arg1: i32) -> (i32, i32) {
    %c0_i32 = arith.constant 0 : i32
    %c0_i32_0 = arith.constant 0 : i32
    %c0_i32_1 = arith.constant 0 : i32
    return %c0_i32, %c0_i32_0 : i32, i32
  }
  func.func @transform_7(%arg0: i32, %arg1: i32) -> (i32, i32) {
    %c0_i32 = arith.constant 0 : i32
    %c0_i32_0 = arith.constant 0 : i32
    %c0_i32_1 = arith.constant 0 : i32
    return %c0_i32, %c0_i32_0 : i32, i32
  }
  func.func @transform_8(%arg0: i32, %arg1: i32) -> (i32, i32, i32) {
    %c0_i32 = arith.constant 0 : i32
    %c0_i32_0 = arith.constant 0 : i32
    %c0_i32_1 = arith.constant 0 : i32
    return %arg0, %c0_i32, %c0_i32_0 : i32, i32, i32
  }
  func.func @transform_9(%arg0: i32, %arg1: i32) -> (i32, i32) {
    %c0_i32 = arith.constant 0 : i32
    %c0_i32_0 = arith.constant 0 : i32
    %c0_i32_1 = arith.constant 0 : i32
    return %c0_i32, %c0_i32_0 : i32, i32
  }
  func.func @transform_10(%arg0: i32, %arg1: i32) -> (i32, i32) {
    %c0_i32 = arith.constant 0 : i32
    %c0_i32_0 = arith.constant 0 : i32
    %c0_i32_1 = arith.constant 0 : i32
    return %c0_i32, %c0_i32_0 : i32, i32
  }
  func.func @transform_11(%arg0: i32, %arg1: i32) -> (i32, i32, i32) {
    %c0_i32 = arith.constant 0 : i32
    %c0_i32_0 = arith.constant 0 : i32
    return %arg0, %arg1, %c0_i32 : i32, i32, i32
  }
  func.func @transform_12(%arg0: i32, %arg1: i32) -> (i32, i32, i32, i32) {
    %c0_i32 = arith.constant 0 : i32
    %c0_i32_0 = arith.constant 0 : i32
    %c0_i32_1 = arith.constant 0 : i32
    return %arg0, %c0_i32, %arg1, %c0_i32_0 : i32, i32, i32, i32
  }
}

module attributes {stable_mosaic.version = 11 : i64} {
  func.func @_ffn_ln_kernel(%arg0: i32, %arg1: memref<16x32xbf16, #tpu.memory_space<vmem>>, %arg2: memref<32x32xbf16, #tpu.memory_space<vmem>>, %arg3: memref<1x32xf32, #tpu.memory_space<vmem>>, %arg4: memref<32x32xbf16, #tpu.memory_space<vmem>>, %arg5: memref<1x32xf32, #tpu.memory_space<vmem>>, %arg6: memref<1x32xf32, #tpu.memory_space<vmem>>, %arg7: memref<1x32xf32, #tpu.memory_space<vmem>>, %arg8: memref<16x32xbf16, #tpu.memory_space<vmem>>) attributes {dimension_semantics = [#tpu.dimension_semantics<parallel>], iteration_bounds = array<i64: 1>, scalar_prefetch = 0 : i64, scratch_operands = 0 : i64, tpu.core_type = #tpu.core_type<tc>, window_params = [{transform_indices = @transform_0, window_bounds = array<i64: 16, 32>}, {pipeline_mode = #tpu.pipeline_mode<synchronous>, transform_indices = @transform_1, window_bounds = array<i64: 32, 32>}, {pipeline_mode = #tpu.pipeline_mode<synchronous>, transform_indices = @transform_2, window_bounds = array<i64: 1, 32>}, {pipeline_mode = #tpu.pipeline_mode<synchronous>, transform_indices = @transform_3, window_bounds = array<i64: 32, 32>}, {pipeline_mode = #tpu.pipeline_mode<synchronous>, transform_indices = @transform_4, window_bounds = array<i64: 1, 32>}, {pipeline_mode = #tpu.pipeline_mode<synchronous>, transform_indices = @transform_5, window_bounds = array<i64: 1, 32>}, {pipeline_mode = #tpu.pipeline_mode<synchronous>, transform_indices = @transform_6, window_bounds = array<i64: 1, 32>}, {transform_indices = @transform_7, window_bounds = array<i64: 16, 32>}]} {
    %c0 = arith.constant 0 : index
    %c0_0 = arith.constant 0 : index
    %0 = vector.load %arg1[%c0, %c0_0] : memref<16x32xbf16, #tpu.memory_space<vmem>>, vector<16x32xbf16>
    %c0_1 = arith.constant 0 : index
    %c0_2 = arith.constant 0 : index
    %1 = vector.load %arg2[%c0_1, %c0_2] : memref<32x32xbf16, #tpu.memory_space<vmem>>, vector<32x32xbf16>
    %cst = arith.constant dense<0.000000e+00> : vector<16x32xf32>
    %2 = tpu.matmul %0, %1, %cst {dimension_numbers = #tpu.dot_dimension_numbers<[1], [0], [0], [1], [0, 0, 1, 1], [], []>} : vector<16x32xbf16>, vector<32x32xbf16>, vector<16x32xf32> -> vector<16x32xf32>
    %c0_3 = arith.constant 0 : index
    %c0_4 = arith.constant 0 : index
    %3 = vector.load %arg3[%c0_3, %c0_4] : memref<1x32xf32, #tpu.memory_space<vmem>>, vector<1x32xf32>
    %4 = vector.broadcast %3 : vector<1x32xf32> to vector<16x32xf32>
    %5 = arith.addf %2, %4 : vector<16x32xf32>
    %cst_5 = arith.constant 0.000000e+00 : f32
    %6 = vector.broadcast %cst_5 : f32 to vector<16x32xf32>
    %7 = arith.maximumf %5, %6 : vector<16x32xf32>
    %8 = arith.truncf %7 : vector<16x32xf32> to vector<16x32xbf16>
    %c0_6 = arith.constant 0 : index
    %c0_7 = arith.constant 0 : index
    %9 = vector.load %arg4[%c0_6, %c0_7] : memref<32x32xbf16, #tpu.memory_space<vmem>>, vector<32x32xbf16>
    %cst_8 = arith.constant dense<0.000000e+00> : vector<16x32xf32>
    %10 = tpu.matmul %8, %9, %cst_8 {dimension_numbers = #tpu.dot_dimension_numbers<[1], [0], [0], [1], [0, 0, 1, 1], [], []>} : vector<16x32xbf16>, vector<32x32xbf16>, vector<16x32xf32> -> vector<16x32xf32>
    %c0_9 = arith.constant 0 : index
    %c0_10 = arith.constant 0 : index
    %11 = vector.load %arg5[%c0_9, %c0_10] : memref<1x32xf32, #tpu.memory_space<vmem>>, vector<1x32xf32>
    %12 = vector.broadcast %11 : vector<1x32xf32> to vector<16x32xf32>
    %13 = arith.addf %10, %12 : vector<16x32xf32>
    %14 = arith.extf %0 : vector<16x32xbf16> to vector<16x32xf32>
    %15 = arith.addf %14, %13 : vector<16x32xf32>
    %c0_11 = arith.constant 0 : index
    %c0_12 = arith.constant 0 : index
    %16 = vector.load %arg6[%c0_11, %c0_12] : memref<1x32xf32, #tpu.memory_space<vmem>>, vector<1x32xf32>
    %c0_13 = arith.constant 0 : index
    %c0_14 = arith.constant 0 : index
    %17 = vector.load %arg7[%c0_13, %c0_14] : memref<1x32xf32, #tpu.memory_space<vmem>>, vector<1x32xf32>
    %cst_15 = arith.constant dense<0.000000e+00> : vector<16xf32>
    %18 = vector.multi_reduction <add>, %15, %cst_15 [1] : vector<16x32xf32> to vector<16xf32>
    %19 = vector.shape_cast %18 : vector<16xf32> to vector<16x1xf32>
    %cst_16 = arith.constant 3.200000e+01 : f32
    %20 = vector.broadcast %cst_16 : f32 to vector<16x1xf32>
    %21 = arith.divf %19, %20 : vector<16x1xf32>
    %22 = vector.broadcast %21 : vector<16x1xf32> to vector<16x32xf32>
    %23 = arith.subf %15, %22 : vector<16x32xf32>
    %24 = arith.mulf %23, %23 : vector<16x32xf32>
    %cst_17 = arith.constant dense<0.000000e+00> : vector<16xf32>
    %25 = vector.multi_reduction <add>, %24, %cst_17 [1] : vector<16x32xf32> to vector<16xf32>
    %26 = vector.shape_cast %25 : vector<16xf32> to vector<16x1xf32>
    %cst_18 = arith.constant 3.200000e+01 : f32
    %27 = vector.broadcast %cst_18 : f32 to vector<16x1xf32>
    %28 = arith.divf %26, %27 : vector<16x1xf32>
    %29 = vector.broadcast %21 : vector<16x1xf32> to vector<16x32xf32>
    %30 = arith.subf %15, %29 : vector<16x32xf32>
    %cst_19 = arith.constant 9.99999974E-6 : f32
    %31 = vector.broadcast %cst_19 : f32 to vector<16x1xf32>
    %32 = arith.addf %28, %31 : vector<16x1xf32>
    %33 = math.rsqrt %32 : vector<16x1xf32>
    %34 = vector.broadcast %33 : vector<16x1xf32> to vector<16x32xf32>
    %35 = arith.mulf %30, %34 : vector<16x32xf32>
    %36 = vector.broadcast %16 : vector<1x32xf32> to vector<16x32xf32>
    %37 = arith.mulf %35, %36 : vector<16x32xf32>
    %38 = vector.broadcast %17 : vector<1x32xf32> to vector<16x32xf32>
    %39 = arith.addf %37, %38 : vector<16x32xf32>
    %40 = arith.truncf %39 : vector<16x32xf32> to vector<16x32xbf16>
    %c0_20 = arith.constant 0 : index
    %c0_21 = arith.constant 0 : index
    %41 = vector.load %arg8[%c0_20, %c0_21] : memref<16x32xbf16, #tpu.memory_space<vmem>>, vector<16x32xbf16>
    tpu.vector_store %arg8[%c0_20, %c0_21], %40 {strides = array<i32>} : memref<16x32xbf16, #tpu.memory_space<vmem>>, vector<16x32xbf16>,
    return
  }
  func.func @transform_0(%arg0: i32) -> (i32, i32) {
    %c0_i32 = arith.constant 0 : i32
    %c0_i32_0 = arith.constant 0 : i32
    return %arg0, %c0_i32 : i32, i32
  }
  func.func @transform_1(%arg0: i32) -> (i32, i32) {
    %c0_i32 = arith.constant 0 : i32
    %c0_i32_0 = arith.constant 0 : i32
    %c0_i32_1 = arith.constant 0 : i32
    return %c0_i32, %c0_i32_0 : i32, i32
  }
  func.func @transform_2(%arg0: i32) -> (i32, i32) {
    %c0_i32 = arith.constant 0 : i32
    %c0_i32_0 = arith.constant 0 : i32
    %c0_i32_1 = arith.constant 0 : i32
    return %c0_i32, %c0_i32_0 : i32, i32
  }
  func.func @transform_3(%arg0: i32) -> (i32, i32) {
    %c0_i32 = arith.constant 0 : i32
    %c0_i32_0 = arith.constant 0 : i32
    %c0_i32_1 = arith.constant 0 : i32
    return %c0_i32, %c0_i32_0 : i32, i32
  }
  func.func @transform_4(%arg0: i32) -> (i32, i32) {
    %c0_i32 = arith.constant 0 : i32
    %c0_i32_0 = arith.constant 0 : i32
    %c0_i32_1 = arith.constant 0 : i32
    return %c0_i32, %c0_i32_0 : i32, i32
  }
  func.func @transform_5(%arg0: i32) -> (i32, i32) {
    %c0_i32 = arith.constant 0 : i32
    %c0_i32_0 = arith.constant 0 : i32
    %c0_i32_1 = arith.constant 0 : i32
    return %c0_i32, %c0_i32_0 : i32, i32
  }
  func.func @transform_6(%arg0: i32) -> (i32, i32) {
    %c0_i32 = arith.constant 0 : i32
    %c0_i32_0 = arith.constant 0 : i32
    %c0_i32_1 = arith.constant 0 : i32
    return %c0_i32, %c0_i32_0 : i32, i32
  }
  func.func @transform_7(%arg0: i32) -> (i32, i32) {
    %c0_i32 = arith.constant 0 : i32
    %c0_i32_0 = arith.constant 0 : i32
    return %arg0, %c0_i32 : i32, i32
  }
}

module attributes {stable_mosaic.version = 11 : i64} {
  func.func @_attn_ln_kernel(%arg0: i32, %arg1: i32, %arg2: memref<1x8x32xbf16, #tpu.memory_space<vmem>>, %arg3: memref<1x8x32xbf16, #tpu.memory_space<vmem>>, %arg4: memref<32x32xbf16, #tpu.memory_space<vmem>>, %arg5: memref<1x32xf32, #tpu.memory_space<vmem>>, %arg6: memref<32x64xbf16, #tpu.memory_space<vmem>>, %arg7: memref<1x64xf32, #tpu.memory_space<vmem>>, %arg8: memref<32x32xbf16, #tpu.memory_space<vmem>>, %arg9: memref<1x32xf32, #tpu.memory_space<vmem>>, %arg10: memref<1x1x8xf32, #tpu.memory_space<vmem>>, %arg11: memref<1x32xf32, #tpu.memory_space<vmem>>, %arg12: memref<1x32xf32, #tpu.memory_space<vmem>>, %arg13: memref<1x8x32xbf16, #tpu.memory_space<vmem>>) attributes {dimension_semantics = [#tpu.dimension_semantics<parallel>, #tpu.dimension_semantics<parallel>], iteration_bounds = array<i64: 2, 1>, scalar_prefetch = 0 : i64, scratch_operands = 0 : i64, tpu.core_type = #tpu.core_type<tc>, window_params = [{transform_indices = @transform_0, window_bounds = array<i64: 1, 8, 32>}, {transform_indices = @transform_1, window_bounds = array<i64: 1, 8, 32>}, {pipeline_mode = #tpu.pipeline_mode<synchronous>, transform_indices = @transform_2, window_bounds = array<i64: 32, 32>}, {pipeline_mode = #tpu.pipeline_mode<synchronous>, transform_indices = @transform_3, window_bounds = array<i64: 1, 32>}, {pipeline_mode = #tpu.pipeline_mode<synchronous>, transform_indices = @transform_4, window_bounds = array<i64: 32, 64>}, {pipeline_mode = #tpu.pipeline_mode<synchronous>, transform_indices = @transform_5, window_bounds = array<i64: 1, 64>}, {pipeline_mode = #tpu.pipeline_mode<synchronous>, transform_indices = @transform_6, window_bounds = array<i64: 32, 32>}, {pipeline_mode = #tpu.pipeline_mode<synchronous>, transform_indices = @transform_7, window_bounds = array<i64: 1, 32>}, {transform_indices = @transform_8, window_bounds = array<i64: 1, 1, 8>}, {pipeline_mode = #tpu.pipeline_mode<synchronous>, transform_indices = @transform_9, window_bounds = array<i64: 1, 32>}, {pipeline_mode = #tpu.pipeline_mode<synchronous>, transform_indices = @transform_10, window_bounds = array<i64: 1, 32>}, {transform_indices = @transform_11, window_bounds = array<i64: 1, 8, 32>}]} {
    %c0 = arith.constant 0 : index
    %c0_0 = arith.constant 0 : index
    %c0_1 = arith.constant 0 : index
    %0 = vector.load %arg2[%c0, %c0_0, %c0_1] : memref<1x8x32xbf16, #tpu.memory_space<vmem>>, vector<1x8x32xbf16>
    %1 = vector.shape_cast %0 : vector<1x8x32xbf16> to vector<8x32xbf16>
    %c0_2 = arith.constant 0 : index
    %c0_3 = arith.constant 0 : index
    %c0_4 = arith.constant 0 : index
    %2 = vector.load %arg3[%c0_2, %c0_3, %c0_4] : memref<1x8x32xbf16, #tpu.memory_space<vmem>>, vector<1x8x32xbf16>
    %3 = vector.shape_cast %2 : vector<1x8x32xbf16> to vector<8x32xbf16>
    %c0_5 = arith.constant 0 : index
    %c0_6 = arith.constant 0 : index
    %4 = vector.load %arg4[%c0_5, %c0_6] : memref<32x32xbf16, #tpu.memory_space<vmem>>, vector<32x32xbf16>
    %cst = arith.constant dense<0.000000e+00> : vector<8x32xf32>
    %5 = tpu.matmul %1, %4, %cst {dimension_numbers = #tpu.dot_dimension_numbers<[1], [0], [0], [1], [0, 0, 1, 1], [], []>} : vector<8x32xbf16>, vector<32x32xbf16>, vector<8x32xf32> -> vector<8x32xf32>
    %c0_7 = arith.constant 0 : index
    %c0_8 = arith.constant 0 : index
    %6 = vector.load %arg5[%c0_7, %c0_8] : memref<1x32xf32, #tpu.memory_space<vmem>>, vector<1x32xf32>
    %7 = vector.broadcast %6 : vector<1x32xf32> to vector<8x32xf32>
    %8 = arith.addf %5, %7 : vector<8x32xf32>
    %c0_9 = arith.constant 0 : index
    %c0_10 = arith.constant 0 : index
    %9 = vector.load %arg6[%c0_9, %c0_10] : memref<32x64xbf16, #tpu.memory_space<vmem>>, vector<32x64xbf16>
    %cst_11 = arith.constant dense<0.000000e+00> : vector<8x64xf32>
    %10 = tpu.matmul %3, %9, %cst_11 {dimension_numbers = #tpu.dot_dimension_numbers<[1], [0], [0], [1], [0, 0, 1, 1], [], []>} : vector<8x32xbf16>, vector<32x64xbf16>, vector<8x64xf32> -> vector<8x64xf32>
    %c0_12 = arith.constant 0 : index
    %c0_13 = arith.constant 0 : index
    %11 = vector.load %arg7[%c0_12, %c0_13] : memref<1x64xf32, #tpu.memory_space<vmem>>, vector<1x64xf32>
    %12 = vector.broadcast %11 : vector<1x64xf32> to vector<8x64xf32>
    %13 = arith.addf %10, %12 : vector<8x64xf32>
    %14 = vector.shape_cast %8 : vector<8x32xf32> to vector<1x8x32xf32>
    %15 = arith.truncf %14 : vector<1x8x32xf32> to vector<1x8x32xbf16>
    %16 = vector.extract_strided_slice %13 {offsets = [0, 0], sizes = [8, 32], strides = [1, 1]} : vector<8x64xf32> to vector<8x32xf32>
    %17 = vector.shape_cast %16 : vector<8x32xf32> to vector<1x8x32xf32>
    %18 = arith.truncf %17 : vector<1x8x32xf32> to vector<1x8x32xbf16>
    %19 = vector.extract_strided_slice %13 {offsets = [0, 32], sizes = [8, 32], strides = [1, 1]} : vector<8x64xf32> to vector<8x32xf32>
    %20 = vector.shape_cast %19 : vector<8x32xf32> to vector<1x8x32xf32>
    %21 = arith.truncf %20 : vector<1x8x32xf32> to vector<1x8x32xbf16>
    %cst_14 = arith.constant dense<0.000000e+00> : vector<1x8x8xf32>
    %22 = tpu.matmul %15, %18, %cst_14 {dimension_numbers = #tpu.dot_dimension_numbers<[2], [2], [1], [1], [0, 0, 0, 1, 1, 1], [0], [0]>} : vector<1x8x32xbf16>, vector<1x8x32xbf16>, vector<1x8x8xf32> -> vector<1x8x8xf32>
    %cst_15 = arith.constant 0.176776692 : f32
    %23 = vector.broadcast %cst_15 : f32 to vector<1x8x8xf32>
    %24 = arith.mulf %22, %23 : vector<1x8x8xf32>
    %c0_16 = arith.constant 0 : index
    %c0_17 = arith.constant 0 : index
    %c0_18 = arith.constant 0 : index
    %25 = vector.load %arg10[%c0_16, %c0_17, %c0_18] : memref<1x1x8xf32, #tpu.memory_space<vmem>>, vector<1x1x8xf32>
    %26 = vector.shape_cast %25 : vector<1x1x8xf32> to vector<1x8xf32>
    %27 = vector.shape_cast %26 : vector<1x8xf32> to vector<1x1x8xf32>
    %28 = vector.broadcast %27 : vector<1x1x8xf32> to vector<1x8x8xf32>
    %29 = arith.addf %24, %28 : vector<1x8x8xf32>
    %cst_19 = arith.constant dense<0xFF800000> : vector<1x8xf32>
    %30 = vector.multi_reduction <maximumf>, %29, %cst_19 [2] : vector<1x8x8xf32> to vector<1x8xf32>
    %31 = vector.shape_cast %30 : vector<1x8xf32> to vector<1x8x1xf32>
    %32 = vector.broadcast %31 : vector<1x8x1xf32> to vector<1x8x8xf32>
    %33 = arith.subf %29, %32 : vector<1x8x8xf32>
    %34 = math.exp %33 : vector<1x8x8xf32>
    %cst_20 = arith.constant dense<0.000000e+00> : vector<1x8xf32>
    %35 = vector.multi_reduction <add>, %34, %cst_20 [2] : vector<1x8x8xf32> to vector<1x8xf32>
    %36 = vector.shape_cast %35 : vector<1x8xf32> to vector<1x8x1xf32>
    %37 = tpu.reciprocal %36 {approx = true} : vector<1x8x1xf32> -> vector<1x8x1xf32>
    %38 = vector.broadcast %37 : vector<1x8x1xf32> to vector<1x8x8xf32>
    %39 = arith.mulf %34, %38 : vector<1x8x8xf32>
    %40 = arith.truncf %39 : vector<1x8x8xf32> to vector<1x8x8xbf16>
    %cst_21 = arith.constant dense<0.000000e+00> : vector<1x8x32xf32>
    %41 = tpu.matmul %40, %21, %cst_21 {dimension_numbers = #tpu.dot_dimension_numbers<[2], [1], [1], [2], [0, 0, 0, 1, 1, 2], [0], [0]>} : vector<1x8x8xbf16>, vector<1x8x32xbf16>, vector<1x8x32xf32> -> vector<1x8x32xf32>
    %42 = vector.shape_cast %41 : vector<1x8x32xf32> to vector<8x32xf32>
    %43 = arith.truncf %42 : vector<8x32xf32> to vector<8x32xbf16>
    %c0_22 = arith.constant 0 : index
    %c0_23 = arith.constant 0 : index
    %44 = vector.load %arg8[%c0_22, %c0_23] : memref<32x32xbf16, #tpu.memory_space<vmem>>, vector<32x32xbf16>
    %cst_24 = arith.constant dense<0.000000e+00> : vector<8x32xf32>
    %45 = tpu.matmul %43, %44, %cst_24 {dimension_numbers = #tpu.dot_dimension_numbers<[1], [0], [0], [1], [0, 0, 1, 1], [], []>} : vector<8x32xbf16>, vector<32x32xbf16>, vector<8x32xf32> -> vector<8x32xf32>
    %c0_25 = arith.constant 0 : index
    %c0_26 = arith.constant 0 : index
    %46 = vector.load %arg9[%c0_25, %c0_26] : memref<1x32xf32, #tpu.memory_space<vmem>>, vector<1x32xf32>
    %47 = vector.broadcast %46 : vector<1x32xf32> to vector<8x32xf32>
    %48 = arith.addf %45, %47 : vector<8x32xf32>
    %49 = arith.extf %1 : vector<8x32xbf16> to vector<8x32xf32>
    %50 = arith.addf %49, %48 : vector<8x32xf32>
    %c0_27 = arith.constant 0 : index
    %c0_28 = arith.constant 0 : index
    %51 = vector.load %arg11[%c0_27, %c0_28] : memref<1x32xf32, #tpu.memory_space<vmem>>, vector<1x32xf32>
    %c0_29 = arith.constant 0 : index
    %c0_30 = arith.constant 0 : index
    %52 = vector.load %arg12[%c0_29, %c0_30] : memref<1x32xf32, #tpu.memory_space<vmem>>, vector<1x32xf32>
    %cst_31 = arith.constant dense<0.000000e+00> : vector<8xf32>
    %53 = vector.multi_reduction <add>, %50, %cst_31 [1] : vector<8x32xf32> to vector<8xf32>
    %54 = vector.shape_cast %53 : vector<8xf32> to vector<8x1xf32>
    %cst_32 = arith.constant 3.200000e+01 : f32
    %55 = vector.broadcast %cst_32 : f32 to vector<8x1xf32>
    %56 = arith.divf %54, %55 : vector<8x1xf32>
    %57 = vector.broadcast %56 : vector<8x1xf32> to vector<8x32xf32>
    %58 = arith.subf %50, %57 : vector<8x32xf32>
    %59 = arith.mulf %58, %58 : vector<8x32xf32>
    %cst_33 = arith.constant dense<0.000000e+00> : vector<8xf32>
    %60 = vector.multi_reduction <add>, %59, %cst_33 [1] : vector<8x32xf32> to vector<8xf32>
    %61 = vector.shape_cast %60 : vector<8xf32> to vector<8x1xf32>
    %cst_34 = arith.constant 3.200000e+01 : f32
    %62 = vector.broadcast %cst_34 : f32 to vector<8x1xf32>
    %63 = arith.divf %61, %62 : vector<8x1xf32>
    %64 = vector.broadcast %56 : vector<8x1xf32> to vector<8x32xf32>
    %65 = arith.subf %50, %64 : vector<8x32xf32>
    %cst_35 = arith.constant 9.99999974E-6 : f32
    %66 = vector.broadcast %cst_35 : f32 to vector<8x1xf32>
    %67 = arith.addf %63, %66 : vector<8x1xf32>
    %68 = math.rsqrt %67 : vector<8x1xf32>
    %69 = vector.broadcast %68 : vector<8x1xf32> to vector<8x32xf32>
    %70 = arith.mulf %65, %69 : vector<8x32xf32>
    %71 = vector.broadcast %51 : vector<1x32xf32> to vector<8x32xf32>
    %72 = arith.mulf %70, %71 : vector<8x32xf32>
    %73 = vector.broadcast %52 : vector<1x32xf32> to vector<8x32xf32>
    %74 = arith.addf %72, %73 : vector<8x32xf32>
    %75 = arith.truncf %74 : vector<8x32xf32> to vector<8x32xbf16>
    %c0_36 = arith.constant 0 : index
    %c0_37 = arith.constant 0 : index
    %c0_38 = arith.constant 0 : index
    %76 = vector.load %arg13[%c0_36, %c0_37, %c0_38] : memref<1x8x32xbf16, #tpu.memory_space<vmem>>, vector<1x8x32xbf16>
    %77 = vector.shape_cast %76 : vector<1x8x32xbf16> to vector<8x32xbf16>
    %78 = vector.shape_cast %75 : vector<8x32xbf16> to vector<1x8x32xbf16>
    tpu.vector_store %arg13[%c0_36, %c0_37, %c0_38], %78 {strides = array<i32>} : memref<1x8x32xbf16, #tpu.memory_space<vmem>>, vector<1x8x32xbf16>,
    return
  }
  func.func @transform_0(%arg0: i32, %arg1: i32) -> (i32, i32, i32) {
    %c0_i32 = arith.constant 0 : i32
    %c0_i32_0 = arith.constant 0 : i32
    return %arg0, %arg1, %c0_i32 : i32, i32, i32
  }
  func.func @transform_1(%arg0: i32, %arg1: i32) -> (i32, i32, i32) {
    %c0_i32 = arith.constant 0 : i32
    %c0_i32_0 = arith.constant 0 : i32
    %c0_i32_1 = arith.constant 0 : i32
    return %arg0, %c0_i32, %c0_i32_0 : i32, i32, i32
  }
  func.func @transform_2(%arg0: i32, %arg1: i32) -> (i32, i32) {
    %c0_i32 = arith.constant 0 : i32
    %c0_i32_0 = arith.constant 0 : i32
    %c0_i32_1 = arith.constant 0 : i32
    return %c0_i32, %c0_i32_0 : i32, i32
  }
  func.func @transform_3(%arg0: i32, %arg1: i32) -> (i32, i32) {
    %c0_i32 = arith.constant 0 : i32
    %c0_i32_0 = arith.constant 0 : i32
    %c0_i32_1 = arith.constant 0 : i32
    return %c0_i32, %c0_i32_0 : i32, i32
  }
  func.func @transform_4(%arg0: i32, %arg1: i32) -> (i32, i32) {
    %c0_i32 = arith.constant 0 : i32
    %c0_i32_0 = arith.constant 0 : i32
    %c0_i32_1 = arith.constant 0 : i32
    return %c0_i32, %c0_i32_0 : i32, i32
  }
  func.func @transform_5(%arg0: i32, %arg1: i32) -> (i32, i32) {
    %c0_i32 = arith.constant 0 : i32
    %c0_i32_0 = arith.constant 0 : i32
    %c0_i32_1 = arith.constant 0 : i32
    return %c0_i32, %c0_i32_0 : i32, i32
  }
  func.func @transform_6(%arg0: i32, %arg1: i32) -> (i32, i32) {
    %c0_i32 = arith.constant 0 : i32
    %c0_i32_0 = arith.constant 0 : i32
    %c0_i32_1 = arith.constant 0 : i32
    return %c0_i32, %c0_i32_0 : i32, i32
  }
  func.func @transform_7(%arg0: i32, %arg1: i32) -> (i32, i32) {
    %c0_i32 = arith.constant 0 : i32
    %c0_i32_0 = arith.constant 0 : i32
    %c0_i32_1 = arith.constant 0 : i32
    return %c0_i32, %c0_i32_0 : i32, i32
  }
  func.func @transform_8(%arg0: i32, %arg1: i32) -> (i32, i32, i32) {
    %c0_i32 = arith.constant 0 : i32
    %c0_i32_0 = arith.constant 0 : i32
    %c0_i32_1 = arith.constant 0 : i32
    return %arg0, %c0_i32, %c0_i32_0 : i32, i32, i32
  }
  func.func @transform_9(%arg0: i32, %arg1: i32) -> (i32, i32) {
    %c0_i32 = arith.constant 0 : i32
    %c0_i32_0 = arith.constant 0 : i32
    %c0_i32_1 = arith.constant 0 : i32
    return %c0_i32, %c0_i32_0 : i32, i32
  }
  func.func @transform_10(%arg0: i32, %arg1: i32) -> (i32, i32) {
    %c0_i32 = arith.constant 0 : i32
    %c0_i32_0 = arith.constant 0 : i32
    %c0_i32_1 = arith.constant 0 : i32
    return %c0_i32, %c0_i32_0 : i32, i32
  }
  func.func @transform_11(%arg0: i32, %arg1: i32) -> (i32, i32, i32) {
    %c0_i32 = arith.constant 0 : i32
    %c0_i32_0 = arith.constant 0 : i32
    return %arg0, %arg1, %c0_i32 : i32, i32, i32
  }
}

module attributes {stable_mosaic.version = 11 : i64} {
  func.func @_attn_ln_kernel(%arg0: i32, %arg1: i32, %arg2: memref<1x8x32xbf16, #tpu.memory_space<vmem>>, %arg3: memref<1x8x32xbf16, #tpu.memory_space<vmem>>, %arg4: memref<32x32xbf16, #tpu.memory_space<vmem>>, %arg5: memref<1x32xf32, #tpu.memory_space<vmem>>, %arg6: memref<32x64xbf16, #tpu.memory_space<vmem>>, %arg7: memref<1x64xf32, #tpu.memory_space<vmem>>, %arg8: memref<32x32xbf16, #tpu.memory_space<vmem>>, %arg9: memref<1x32xf32, #tpu.memory_space<vmem>>, %arg10: memref<1x1x8xf32, #tpu.memory_space<vmem>>, %arg11: memref<1x32xf32, #tpu.memory_space<vmem>>, %arg12: memref<1x32xf32, #tpu.memory_space<vmem>>, %arg13: memref<1x8x32xbf16, #tpu.memory_space<vmem>>) attributes {dimension_semantics = [#tpu.dimension_semantics<parallel>, #tpu.dimension_semantics<parallel>], iteration_bounds = array<i64: 2, 1>, scalar_prefetch = 0 : i64, scratch_operands = 0 : i64, tpu.core_type = #tpu.core_type<tc>, window_params = [{transform_indices = @transform_0, window_bounds = array<i64: 1, 8, 32>}, {transform_indices = @transform_1, window_bounds = array<i64: 1, 8, 32>}, {pipeline_mode = #tpu.pipeline_mode<synchronous>, transform_indices = @transform_2, window_bounds = array<i64: 32, 32>}, {pipeline_mode = #tpu.pipeline_mode<synchronous>, transform_indices = @transform_3, window_bounds = array<i64: 1, 32>}, {pipeline_mode = #tpu.pipeline_mode<synchronous>, transform_indices = @transform_4, window_bounds = array<i64: 32, 64>}, {pipeline_mode = #tpu.pipeline_mode<synchronous>, transform_indices = @transform_5, window_bounds = array<i64: 1, 64>}, {pipeline_mode = #tpu.pipeline_mode<synchronous>, transform_indices = @transform_6, window_bounds = array<i64: 32, 32>}, {pipeline_mode = #tpu.pipeline_mode<synchronous>, transform_indices = @transform_7, window_bounds = array<i64: 1, 32>}, {transform_indices = @transform_8, window_bounds = array<i64: 1, 1, 8>}, {pipeline_mode = #tpu.pipeline_mode<synchronous>, transform_indices = @transform_9, window_bounds = array<i64: 1, 32>}, {pipeline_mode = #tpu.pipeline_mode<synchronous>, transform_indices = @transform_10, window_bounds = array<i64: 1, 32>}, {transform_indices = @transform_11, window_bounds = array<i64: 1, 8, 32>}]} {
    %c0 = arith.constant 0 : index
    %c0_0 = arith.constant 0 : index
    %c0_1 = arith.constant 0 : index
    %0 = vector.load %arg2[%c0, %c0_0, %c0_1] : memref<1x8x32xbf16, #tpu.memory_space<vmem>>, vector<1x8x32xbf16>
    %1 = vector.shape_cast %0 : vector<1x8x32xbf16> to vector<8x32xbf16>
    %c0_2 = arith.constant 0 : index
    %c0_3 = arith.constant 0 : index
    %c0_4 = arith.constant 0 : index
    %2 = vector.load %arg3[%c0_2, %c0_3, %c0_4] : memref<1x8x32xbf16, #tpu.memory_space<vmem>>, vector<1x8x32xbf16>
    %3 = vector.shape_cast %2 : vector<1x8x32xbf16> to vector<8x32xbf16>
    %c0_5 = arith.constant 0 : index
    %c0_6 = arith.constant 0 : index
    %4 = vector.load %arg4[%c0_5, %c0_6] : memref<32x32xbf16, #tpu.memory_space<vmem>>, vector<32x32xbf16>
    %cst = arith.constant dense<0.000000e+00> : vector<8x32xf32>
    %5 = tpu.matmul %1, %4, %cst {dimension_numbers = #tpu.dot_dimension_numbers<[1], [0], [0], [1], [0, 0, 1, 1], [], []>} : vector<8x32xbf16>, vector<32x32xbf16>, vector<8x32xf32> -> vector<8x32xf32>
    %c0_7 = arith.constant 0 : index
    %c0_8 = arith.constant 0 : index
    %6 = vector.load %arg5[%c0_7, %c0_8] : memref<1x32xf32, #tpu.memory_space<vmem>>, vector<1x32xf32>
    %7 = vector.broadcast %6 : vector<1x32xf32> to vector<8x32xf32>
    %8 = arith.addf %5, %7 : vector<8x32xf32>
    %c0_9 = arith.constant 0 : index
    %c0_10 = arith.constant 0 : index
    %9 = vector.load %arg6[%c0_9, %c0_10] : memref<32x64xbf16, #tpu.memory_space<vmem>>, vector<32x64xbf16>
    %cst_11 = arith.constant dense<0.000000e+00> : vector<8x64xf32>
    %10 = tpu.matmul %3, %9, %cst_11 {dimension_numbers = #tpu.dot_dimension_numbers<[1], [0], [0], [1], [0, 0, 1, 1], [], []>} : vector<8x32xbf16>, vector<32x64xbf16>, vector<8x64xf32> -> vector<8x64xf32>
    %c0_12 = arith.constant 0 : index
    %c0_13 = arith.constant 0 : index
    %11 = vector.load %arg7[%c0_12, %c0_13] : memref<1x64xf32, #tpu.memory_space<vmem>>, vector<1x64xf32>
    %12 = vector.broadcast %11 : vector<1x64xf32> to vector<8x64xf32>
    %13 = arith.addf %10, %12 : vector<8x64xf32>
    %14 = vector.shape_cast %8 : vector<8x32xf32> to vector<1x8x32xf32>
    %15 = arith.truncf %14 : vector<1x8x32xf32> to vector<1x8x32xbf16>
    %16 = vector.extract_strided_slice %13 {offsets = [0, 0], sizes = [8, 32], strides = [1, 1]} : vector<8x64xf32> to vector<8x32xf32>
    %17 = vector.shape_cast %16 : vector<8x32xf32> to vector<1x8x32xf32>
    %18 = arith.truncf %17 : vector<1x8x32xf32> to vector<1x8x32xbf16>
    %19 = vector.extract_strided_slice %13 {offsets = [0, 32], sizes = [8, 32], strides = [1, 1]} : vector<8x64xf32> to vector<8x32xf32>
    %20 = vector.shape_cast %19 : vector<8x32xf32> to vector<1x8x32xf32>
    %21 = arith.truncf %20 : vector<1x8x32xf32> to vector<1x8x32xbf16>
    %cst_14 = arith.constant dense<0.000000e+00> : vector<1x8x8xf32>
    %22 = tpu.matmul %15, %18, %cst_14 {dimension_numbers = #tpu.dot_dimension_numbers<[2], [2], [1], [1], [0, 0, 0, 1, 1, 1], [0], [0]>} : vector<1x8x32xbf16>, vector<1x8x32xbf16>, vector<1x8x8xf32> -> vector<1x8x8xf32>
    %cst_15 = arith.constant 0.176776692 : f32
    %23 = vector.broadcast %cst_15 : f32 to vector<1x8x8xf32>
    %24 = arith.mulf %22, %23 : vector<1x8x8xf32>
    %c0_16 = arith.constant 0 : index
    %c0_17 = arith.constant 0 : index
    %c0_18 = arith.constant 0 : index
    %25 = vector.load %arg10[%c0_16, %c0_17, %c0_18] : memref<1x1x8xf32, #tpu.memory_space<vmem>>, vector<1x1x8xf32>
    %26 = vector.shape_cast %25 : vector<1x1x8xf32> to vector<1x8xf32>
    %27 = vector.shape_cast %26 : vector<1x8xf32> to vector<1x1x8xf32>
    %28 = vector.broadcast %27 : vector<1x1x8xf32> to vector<1x8x8xf32>
    %29 = arith.addf %24, %28 : vector<1x8x8xf32>
    %c8_i32 = arith.constant 8 : i32
    %30 = arith.muli %arg1, %c8_i32 : i32
    %31 = tpu.iota {dimensions = array<i32: 0>} : vector<8x8xi32>
    %32 = vector.broadcast %30 : i32 to vector<8x8xi32>
    %33 = arith.addi %31, %32 : vector<8x8xi32>
    %34 = tpu.iota {dimensions = array<i32: 1>} : vector<8x8xi32>
    %35 = arith.cmpi sge, %33, %34 : vector<8x8xi32>
    %36 = vector.shape_cast %35 : vector<8x8xi1> to vector<1x8x8xi1>
    %cst_19 = arith.constant -1.000000e+10 : f32
    %37 = vector.broadcast %cst_19 : f32 to vector<1x8x8xf32>
    %38 = arith.select %36, %29, %37 : vector<1x8x8xi1>, vector<1x8x8xf32>
    %cst_20 = arith.constant dense<0xFF800000> : vector<1x8xf32>
    %39 = vector.multi_reduction <maximumf>, %38, %cst_20 [2] : vector<1x8x8xf32> to vector<1x8xf32>
    %40 = vector.shape_cast %39 : vector<1x8xf32> to vector<1x8x1xf32>
    %41 = vector.broadcast %40 : vector<1x8x1xf32> to vector<1x8x8xf32>
    %42 = arith.subf %38, %41 : vector<1x8x8xf32>
    %43 = math.exp %42 : vector<1x8x8xf32>
    %cst_21 = arith.constant dense<0.000000e+00> : vector<1x8xf32>
    %44 = vector.multi_reduction <add>, %43, %cst_21 [2] : vector<1x8x8xf32> to vector<1x8xf32>
    %45 = vector.shape_cast %44 : vector<1x8xf32> to vector<1x8x1xf32>
    %46 = tpu.reciprocal %45 {approx = true} : vector<1x8x1xf32> -> vector<1x8x1xf32>
    %47 = vector.broadcast %46 : vector<1x8x1xf32> to vector<1x8x8xf32>
    %48 = arith.mulf %43, %47 : vector<1x8x8xf32>
    %49 = arith.truncf %48 : vector<1x8x8xf32> to vector<1x8x8xbf16>
    %cst_22 = arith.constant dense<0.000000e+00> : vector<1x8x32xf32>
    %50 = tpu.matmul %49, %21, %cst_22 {dimension_numbers = #tpu.dot_dimension_numbers<[2], [1], [1], [2], [0, 0, 0, 1, 1, 2], [0], [0]>} : vector<1x8x8xbf16>, vector<1x8x32xbf16>, vector<1x8x32xf32> -> vector<1x8x32xf32>
    %51 = vector.shape_cast %50 : vector<1x8x32xf32> to vector<8x32xf32>
    %52 = arith.truncf %51 : vector<8x32xf32> to vector<8x32xbf16>
    %c0_23 = arith.constant 0 : index
    %c0_24 = arith.constant 0 : index
    %53 = vector.load %arg8[%c0_23, %c0_24] : memref<32x32xbf16, #tpu.memory_space<vmem>>, vector<32x32xbf16>
    %cst_25 = arith.constant dense<0.000000e+00> : vector<8x32xf32>
    %54 = tpu.matmul %52, %53, %cst_25 {dimension_numbers = #tpu.dot_dimension_numbers<[1], [0], [0], [1], [0, 0, 1, 1], [], []>} : vector<8x32xbf16>, vector<32x32xbf16>, vector<8x32xf32> -> vector<8x32xf32>
    %c0_26 = arith.constant 0 : index
    %c0_27 = arith.constant 0 : index
    %55 = vector.load %arg9[%c0_26, %c0_27] : memref<1x32xf32, #tpu.memory_space<vmem>>, vector<1x32xf32>
    %56 = vector.broadcast %55 : vector<1x32xf32> to vector<8x32xf32>
    %57 = arith.addf %54, %56 : vector<8x32xf32>
    %58 = arith.extf %1 : vector<8x32xbf16> to vector<8x32xf32>
    %59 = arith.addf %58, %57 : vector<8x32xf32>
    %c0_28 = arith.constant 0 : index
    %c0_29 = arith.constant 0 : index
    %60 = vector.load %arg11[%c0_28, %c0_29] : memref<1x32xf32, #tpu.memory_space<vmem>>, vector<1x32xf32>
    %c0_30 = arith.constant 0 : index
    %c0_31 = arith.constant 0 : index
    %61 = vector.load %arg12[%c0_30, %c0_31] : memref<1x32xf32, #tpu.memory_space<vmem>>, vector<1x32xf32>
    %cst_32 = arith.constant dense<0.000000e+00> : vector<8xf32>
    %62 = vector.multi_reduction <add>, %59, %cst_32 [1] : vector<8x32xf32> to vector<8xf32>
    %63 = vector.shape_cast %62 : vector<8xf32> to vector<8x1xf32>
    %cst_33 = arith.constant 3.200000e+01 : f32
    %64 = vector.broadcast %cst_33 : f32 to vector<8x1xf32>
    %65 = arith.divf %63, %64 : vector<8x1xf32>
    %66 = vector.broadcast %65 : vector<8x1xf32> to vector<8x32xf32>
    %67 = arith.subf %59, %66 : vector<8x32xf32>
    %68 = arith.mulf %67, %67 : vector<8x32xf32>
    %cst_34 = arith.constant dense<0.000000e+00> : vector<8xf32>
    %69 = vector.multi_reduction <add>, %68, %cst_34 [1] : vector<8x32xf32> to vector<8xf32>
    %70 = vector.shape_cast %69 : vector<8xf32> to vector<8x1xf32>
    %cst_35 = arith.constant 3.200000e+01 : f32
    %71 = vector.broadcast %cst_35 : f32 to vector<8x1xf32>
    %72 = arith.divf %70, %71 : vector<8x1xf32>
    %73 = vector.broadcast %65 : vector<8x1xf32> to vector<8x32xf32>
    %74 = arith.subf %59, %73 : vector<8x32xf32>
    %cst_36 = arith.constant 9.99999974E-6 : f32
    %75 = vector.broadcast %cst_36 : f32 to vector<8x1xf32>
    %76 = arith.addf %72, %75 : vector<8x1xf32>
    %77 = math.rsqrt %76 : vector<8x1xf32>
    %78 = vector.broadcast %77 : vector<8x1xf32> to vector<8x32xf32>
    %79 = arith.mulf %74, %78 : vector<8x32xf32>
    %80 = vector.broadcast %60 : vector<1x32xf32> to vector<8x32xf32>
    %81 = arith.mulf %79, %80 : vector<8x32xf32>
    %82 = vector.broadcast %61 : vector<1x32xf32> to vector<8x32xf32>
    %83 = arith.addf %81, %82 : vector<8x32xf32>
    %84 = arith.truncf %83 : vector<8x32xf32> to vector<8x32xbf16>
    %c0_37 = arith.constant 0 : index
    %c0_38 = arith.constant 0 : index
    %c0_39 = arith.constant 0 : index
    %85 = vector.load %arg13[%c0_37, %c0_38, %c0_39] : memref<1x8x32xbf16, #tpu.memory_space<vmem>>, vector<1x8x32xbf16>
    %86 = vector.shape_cast %85 : vector<1x8x32xbf16> to vector<8x32xbf16>
    %87 = vector.shape_cast %84 : vector<8x32xbf16> to vector<1x8x32xbf16>
    tpu.vector_store %arg13[%c0_37, %c0_38, %c0_39], %87 {strides = array<i32>} : memref<1x8x32xbf16, #tpu.memory_space<vmem>>, vector<1x8x32xbf16>,
    return
  }
  func.func @transform_0(%arg0: i32, %arg1: i32) -> (i32, i32, i32) {
    %c0_i32 = arith.constant 0 : i32
    %c0_i32_0 = arith.constant 0 : i32
    return %arg0, %arg1, %c0_i32 : i32, i32, i32
  }
  func.func @transform_1(%arg0: i32, %arg1: i32) -> (i32, i32, i32) {
    %c0_i32 = arith.constant 0 : i32
    %c0_i32_0 = arith.constant 0 : i32
    %c0_i32_1 = arith.constant 0 : i32
    return %arg0, %c0_i32, %c0_i32_0 : i32, i32, i32
  }
  func.func @transform_2(%arg0: i32, %arg1: i32) -> (i32, i32) {
    %c0_i32 = arith.constant 0 : i32
    %c0_i32_0 = arith.constant 0 : i32
    %c0_i32_1 = arith.constant 0 : i32
    return %c0_i32, %c0_i32_0 : i32, i32
  }
  func.func @transform_3(%arg0: i32, %arg1: i32) -> (i32, i32) {
    %c0_i32 = arith.constant 0 : i32
    %c0_i32_0 = arith.constant 0 : i32
    %c0_i32_1 = arith.constant 0 : i32
    return %c0_i32, %c0_i32_0 : i32, i32
  }
  func.func @transform_4(%arg0: i32, %arg1: i32) -> (i32, i32) {
    %c0_i32 = arith.constant 0 : i32
    %c0_i32_0 = arith.constant 0 : i32
    %c0_i32_1 = arith.constant 0 : i32
    return %c0_i32, %c0_i32_0 : i32, i32
  }
  func.func @transform_5(%arg0: i32, %arg1: i32) -> (i32, i32) {
    %c0_i32 = arith.constant 0 : i32
    %c0_i32_0 = arith.constant 0 : i32
    %c0_i32_1 = arith.constant 0 : i32
    return %c0_i32, %c0_i32_0 : i32, i32
  }
  func.func @transform_6(%arg0: i32, %arg1: i32) -> (i32, i32) {
    %c0_i32 = arith.constant 0 : i32
    %c0_i32_0 = arith.constant 0 : i32
    %c0_i32_1 = arith.constant 0 : i32
    return %c0_i32, %c0_i32_0 : i32, i32
  }
  func.func @transform_7(%arg0: i32, %arg1: i32) -> (i32, i32) {
    %c0_i32 = arith.constant 0 : i32
    %c0_i32_0 = arith.constant 0 : i32
    %c0_i32_1 = arith.constant 0 : i32
    return %c0_i32, %c0_i32_0 : i32, i32
  }
  func.func @transform_8(%arg0: i32, %arg1: i32) -> (i32, i32, i32) {
    %c0_i32 = arith.constant 0 : i32
    %c0_i32_0 = arith.constant 0 : i32
    %c0_i32_1 = arith.constant 0 : i32
    return %arg0, %c0_i32, %c0_i32_0 : i32, i32, i32
  }
  func.func @transform_9(%arg0: i32, %arg1: i32) -> (i32, i32) {
    %c0_i32 = arith.constant 0 : i32
    %c0_i32_0 = arith.constant 0 : i32
    %c0_i32_1 = arith.constant 0 : i32
    return %c0_i32, %c0_i32_0 : i32, i32
  }
  func.func @transform_10(%arg0: i32, %arg1: i32) -> (i32, i32) {
    %c0_i32 = arith.constant 0 : i32
    %c0_i32_0 = arith.constant 0 : i32
    %c0_i32_1 = arith.constant 0 : i32
    return %c0_i32, %c0_i32_0 : i32, i32
  }
  func.func @transform_11(%arg0: i32, %arg1: i32) -> (i32, i32, i32) {
    %c0_i32 = arith.constant 0 : i32
    %c0_i32_0 = arith.constant 0 : i32
    return %arg0, %arg1, %c0_i32 : i32, i32, i32
  }
}

module attributes {stable_mosaic.version = 11 : i64} {
  func.func @_linear_kernel(%arg0: i32, %arg1: i32, %arg2: i32, %arg3: memref<16x32xbf16, #tpu.memory_space<vmem>>, %arg4: memref<32x128xbf16, #tpu.memory_space<vmem>>, %arg5: memref<1x128xf32, #tpu.memory_space<vmem>>, %arg6: memref<16x128xf32, #tpu.memory_space<vmem>>, %arg7: memref<16x128xf32, #tpu.memory_space<vmem>>) attributes {dimension_semantics = [#tpu.dimension_semantics<parallel>, #tpu.dimension_semantics<parallel>, #tpu.dimension_semantics<arbitrary>], iteration_bounds = array<i64: 1, 1, 1>, scalar_prefetch = 0 : i64, scratch_operands = 1 : i64, tpu.core_type = #tpu.core_type<tc>, window_params = [{transform_indices = @transform_0, window_bounds = array<i64: 16, 32>}, {transform_indices = @transform_1, window_bounds = array<i64: 32, 128>}, {transform_indices = @transform_2, window_bounds = array<i64: 1, 128>}, {transform_indices = @transform_3, window_bounds = array<i64: 16, 128>}]} {
    %c0_i32 = arith.constant 0 : i32
    %0 = arith.cmpi eq, %arg2, %c0_i32 : i32
    %1 = arith.extui %0 : i1 to i32
    %c0_i32_0 = arith.constant 0 : i32
    %2 = arith.cmpi ne, %1, %c0_i32_0 : i32
    scf.if %2 {
      %cst_10 = arith.constant 0.000000e+00 : f32
      %12 = vector.broadcast %cst_10 : f32 to vector<16x128xf32>
      %c0_11 = arith.constant 0 : index
      %c0_12 = arith.constant 0 : index
      %13 = vector.load %arg7[%c0_11, %c0_12] : memref<16x128xf32, #tpu.memory_space<vmem>>, vector<16x128xf32>
      tpu.vector_store %arg7[%c0_11, %c0_12], %12 {strides = array<i32>} : memref<16x128xf32, #tpu.memory_space<vmem>>, vector<16x128xf32>,
    } else {
    }
    %c0 = arith.constant 0 : index
    %c0_1 = arith.constant 0 : index
    %3 = vector.load %arg7[%c0, %c0_1] : memref<16x128xf32, #tpu.memory_space<vmem>>, vector<16x128xf32>
    %c0_2 = arith.constant 0 : index
    %c0_3 = arith.constant 0 : index
    %4 = vector.load %arg3[%c0_2, %c0_3] : memref<16x32xbf16, #tpu.memory_space<vmem>>, vector<16x32xbf16>
    %c0_4 = arith.constant 0 : index
    %c0_5 = arith.constant 0 : index
    %5 = vector.load %arg4[%c0_4, %c0_5] : memref<32x128xbf16, #tpu.memory_space<vmem>>, vector<32x128xbf16>
    %cst = arith.constant dense<0.000000e+00> : vector<16x128xf32>
    %6 = tpu.matmul %4, %5, %cst {dimension_numbers = #tpu.dot_dimension_numbers<[1], [0], [0], [1], [0, 0, 1, 1], [], []>} : vector<16x32xbf16>, vector<32x128xbf16>, vector<16x128xf32> -> vector<16x128xf32>
    %7 = arith.addf %3, %6 : vector<16x128xf32>
    %c0_6 = arith.constant 0 : index
    %c0_7 = arith.constant 0 : index
    %8 = vector.load %arg7[%c0_6, %c0_7] : memref<16x128xf32, #tpu.memory_space<vmem>>, vector<16x128xf32>
    tpu.vector_store %arg7[%c0_6, %c0_7], %7 {strides = array<i32>} : memref<16x128xf32, #tpu.memory_space<vmem>>, vector<16x128xf32>,
    %c0_i32_8 = arith.constant 0 : i32
    %9 = arith.cmpi eq, %arg2, %c0_i32_8 : i32
    %10 = arith.extui %9 : i1 to i32
    %c0_i32_9 = arith.constant 0 : i32
    %11 = arith.cmpi ne, %10, %c0_i32_9 : i32
    scf.if %11 {
      %c0_10 = arith.constant 0 : index
      %c0_11 = arith.constant 0 : index
      %12 = vector.load %arg7[%c0_10, %c0_11] : memref<16x128xf32, #tpu.memory_space<vmem>>, vector<16x128xf32>
      %c0_12 = arith.constant 0 : index
      %c0_13 = arith.constant 0 : index
      %13 = vector.load %arg5[%c0_12, %c0_13] : memref<1x128xf32, #tpu.memory_space<vmem>>, vector<1x128xf32>
      %14 = vector.broadcast %13 : vector<1x128xf32> to vector<16x128xf32>
      %15 = arith.addf %12, %14 : vector<16x128xf32>
      %c0_14 = arith.constant 0 : index
      %c0_15 = arith.constant 0 : index
      %16 = vector.load %arg6[%c0_14, %c0_15] : memref<16x128xf32, #tpu.memory_space<vmem>>, vector<16x128xf32>
      tpu.vector_store %arg6[%c0_14, %c0_15], %15 {strides = array<i32>} : memref<16x128xf32, #tpu.memory_space<vmem>>, vector<16x128xf32>,
    } else {
    }
    return
  }
  func.func @transform_0(%arg0: i32, %arg1: i32, %arg2: i32) -> (i32, i32) {
    %c0_i32 = arith.constant 0 : i32
    return %arg0, %arg2 : i32, i32
  }
  func.func @transform_1(%arg0: i32, %arg1: i32, %arg2: i32) -> (i32, i32) {
    %c0_i32 = arith.constant 0 : i32
    return %arg2, %arg1 : i32, i32
  }
  func.func @transform_2(%arg0: i32, %arg1: i32, %arg2: i32) -> (i32, i32) {
    %c0_i32 = arith.constant 0 : i32
    %c0_i32_0 = arith.constant 0 : i32
    return %c0_i32, %arg1 : i32, i32
  }
  func.func @transform_3(%arg0: i32, %arg1: i32, %arg2: i32) -> (i32, i32) {
    %c0_i32 = arith.constant 0 : i32
    return %arg0, %arg1 : i32, i32
  }
}

</mosaic_0001>

<bundles_post_ra>
// kernel: tpu_custom_call.1
= control target key start
LH: loop header
LB: loop body
LE: loop exit
PB: predicated region body
PF: predicated region fallthrough
CT: control target
= control target key end

     0   :  { %6 = vsyncpa [#allocation3], 0  ;;  %s482_s0 = inlined_call_operand.hbm [shape: f32[8,128], index: 0, kind: input, shape index: {}]   ;;  %s483_s1 = inlined_call_operand.hbm [shape: f32[16,128], index: 1, kind: output, shape index: {}]  }
   0x1   :  { %7 = vsyncpa [#allocation4], 0 }
   0x2   :  { %9 = vsyncpa [#allocation4 + $0x1], 0  ;;  %s352_s6 = smov 0   ;;  %s354_s7 = smov 0  }
   0x3   :  { %s356_s8 = smov 0   ;;  %s358_s9 = smov 0  }
   0x4 LB: > { %s373_s10 = sadd.s32 4294967295, %s338_s9   ;;  %s184_s11 = sadd.s32 4294967294, %s338_s9   ;;  %s338_s9 = sphi %s358_s9, %s499_s9   ;;  %s334_s8 = sphi %s356_s8, %s498_s8   ;;  %s330_s7 = sphi %s354_s7, %s497_s7   ;;  %s326_s6 = sphi %s352_s6, %s496_s6  }
   0x5   : > { %s377_s12 = sadd.s32 1, %s338_s9   ;;  %s43_s13 = sadd.s32 1, %s334_s8 }
   0x6   : > { %s40_s14 = ssub.s32 %s338_s9, %s377_s12  ;;  %p53_p0 = scmp.ne.s32.totalorder %s334_s8, %s330_s7 }
   0x7   : > { %p41_p1 = scmp.eq.s32.totalorder %s40_s14, 0  ;;  %p54_p2 = scmp.eq.s32.totalorder %s373_s10, 1 }
   0x8   : > { %p59_p3 = scmp.ne.s32.totalorder %s330_s7, %s326_s6  ;;  %p60_p4 = scmp.eq.s32.totalorder %s184_s11, 1 }
   0x9   : > { %s388_s15 = scalar_select %p41_p1, %s334_s8, %s43_s13  }
   0xa   : > { %p390_p5 = por %p54_p2, %p53_p0  ;;  %p394_p6 = por %p60_p4, %p59_p3 }
   0xb   : > { %p185_p7 = scmp.ge.s32.totalorder %s338_s9, 1  ;;  %p67_p8 = scmp.lt.s32.totalorder %s338_s9, 3 }
   0xc   : > { %s487_s16 = scalar_select %p390_p5, 1, 0 }
   0xd   : > { %s488_s17 = scalar_select %p394_p6, 1, 0 }
   0xe   : > { %p484_p9 = scmp.eq.s32.totalorder %s373_s10, 0  ;;  %p401_p10 = pnand %p185_p7, %p67_p8 }
   0xf   : > { %s340_s19 = smov [#allocation2]   ;;  %s244_s24 = scalar_lea.hbm %s482_s0, 128 }
  0x10   : > { %s489_s18 = scalar_select %p401_p10, 1, 0 }
  0x11   : > { %s80_s20 = sshll.u32 %s340_s19, 4  ;;  %p200_p11 = pneg %p401_p10  ;;  %s81_s20 = int_to_ptr.vmem [resolvable:$true] %s80_s20 }
  0x12   : > { %p245_p13 = scmp.ne.s32.totalorder %s482_s0, %s244_s24  ;;  %p251_p3 = scmp.lt.u32.totalorder %s244_s24, %s482_s0 }
  0x13   : > { %p409_p12 = pnand %p484_p9, %p200_p11 }
  0x15   : > { %p246_p0 = pneg %p409_p12 }
  0x17   : > { %p247_p1 = pnand %p246_p0, %p245_p13 }
  0x19   : > { %p248_p2 = pneg %p247_p1 }
  0x1b   : > { %p253_p4 = pnand %p251_p3, %p248_p2 }
  0x1d   : > { %256 = shalt.err (!%p253_p4)
}
  0x1e   : > { %s257_s29 = scalar_lea.vmem %s81_s20, 128  ;;  %p265_p9 = scmp.lt.s32.totalorder %s81_s20, %s81_s20 }
  0x1f   : > { %p258_p7 = scmp.ne.s32.totalorder %s81_s20, %s257_s29  ;;  %p266_p6 = scmp.lt.s32.totalorder %s257_s29, %s257_s29 }
  0x21   : > { %p260_p8 = pnand %p258_p7, %p246_p0  ;;  %p267_p5 = por %p266_p6, %p265_p9 }
  0x23   : > { %p261_p11 = pneg %p260_p8 }
  0x25   : > { %p268_p10 = pnand %p267_p5, %p261_p11 }
  0x27   : > { %271 = shalt.err (!%p268_p10)
}
  0x28   : > { %203 = dma.hbm_to_vmem [thread:$0]  (!%p409_p12), %s482_s0, 128, %s81_s20, [#allocation3]  }
  0x29   : > { %p491_p13 = scmp.ne.s32.totalorder %s489_s18, 0 }
  0x2a   : > { %p492_p1 = scmp.eq.s32.totalorder (!%p491_p13), %s373_s10, 0 }
  0x2b   : > { %93 = sbr.rel (%p491_p13) target bundleno = 77 (0x4d), region = 24 }
  0x32   : > { %317 = dma.done.wait (%p492_p1), [#allocation3], 128   ;;  %p493_p0 = pmov %p492_p1 }
  0x33   : > { %s105_s3 = sand.u32 1, %s330_s7   ;;  %s191_s13 = sshll.u32 %s373_s10, 7  ;;  %v108_v0 = vld [vmem:[#allocation2] sm:$0xff] }
  0x34   : > { %319 = vsyncadd (%p493_p0), [#allocation3], 4294967168  ;;  %s189_s4 = sshll.u32 %s105_s3, 3  ;;  %v109_v1 = vadd.f32 1.0, %v108_v0  ;;  %s442_s19 = scalar_lea.hbm %s483_s1, %s191_s13 }
  0x35   : > { %s107_s5 = scalar_lea.vmem [#allocation5], %s189_s4  ;;  %s112_s20 = scalar_lea.sflag [#allocation4], %s105_s3 }
  0x36   : > { %s125_s11 = sshll.u32 %s107_s5, 4  ;;  %110 = vst [vmem:[%s107_s5] sm:$0xff] %v109_v1  ;;  %p494_p6 = scmp.ne.s32.totalorder %s487_s16, 0  ;;  %s437_s11 = int_to_ptr.vmem [resolvable:$true] %s125_s11 }
  0x37   : > { %s272_s21 = scalar_lea.vmem %s437_s11, 128  ;;  %s341_s10 = smov [#allocation5]  }
  0x38   : > { %p273_p5 = scmp.ne.s32.totalorder %s437_s11, %s272_s21  ;;  %s276_s22 = sshll.u32 %s341_s10, 4  ;;  %s277_s22 = int_to_ptr.vmem [resolvable:$false] %s276_s22 }
  0x39   : > { %s278_s23 = scalar_lea.vmem %s277_s22, 256  ;;  %p279_p12 = scmp.lt.s32.totalorder %s437_s11, %s277_s22 }
  0x3a   : > { %p274_p9 = pnand %p273_p5, %p494_p6  ;;  %p280_p2 = scmp.lt.s32.totalorder %s278_s23, %s272_s21 }
  0x3c   : > { %p275_p10 = pneg %p274_p9  ;;  %p281_p3 = por %p280_p2, %p279_p12 }
  0x3e   : > { %p282_p4 = pnand %p281_p3, %p275_p10 }
  0x40   : > { %285 = shalt.err (!%p282_p4)
}
  0x41   : > { %s286_s24 = scalar_lea.hbm %s442_s19, 128  ;;  %s290_s27 = scalar_lea.hbm %s483_s1, 256 }
  0x42   : > { %p287_p7 = scmp.ne.s32.totalorder %s442_s19, %s286_s24  ;;  %p291_p13 = scmp.lt.u32.totalorder %s442_s19, %s483_s1 }
  0x43   : > { %p292_p1 = scmp.lt.u32.totalorder %s290_s27, %s286_s24  ;;  %p294_p5 = scmp.lt.u32.totalorder %s286_s24, %s442_s19 }
  0x44   : > { %p288_p8 = pnand %p287_p7, %p494_p6 }
  0x45   : > { %p293_p0 = por %p292_p1, %p291_p13 }
  0x46   : > { %p289_p11 = pneg %p288_p8 }
  0x47   : > { %p295_p9 = por %p294_p5, %p293_p0 }
  0x49   : > { %p296_p10 = pnand %p295_p9, %p289_p11 }
  0x4b   : > { %299 = shalt.err (!%p296_p10)
}
  0x4c   : > { %198 = dma.vmem_to_hbm [thread:$0]  (%p494_p6), %s437_s11, 128, %s442_s19, %s112_s20  }
  0x4d PF: > { %p210_p12 = scmp.ge.s32.totalorder %s338_s9, 2  ;;  %s137_s30 = sand.u32 1, %s326_s6  }
  0x4e   : > { %p495_p2 = scmp.ne.s32.totalorder %s488_s17, 0  ;;  %s138_s2 = scalar_lea.sflag [#allocation4], %s137_s30 }
  0x50   : > { %p205_p3 = pnand %p210_p12, %p495_p2 }
  0x52   : > { %321 = dma.done.wait (!%p205_p3), %s138_s2, 128  }
  0x53   : > { %323 = vsyncadd (!%p205_p3), %s138_s2, 4294967168  ;;  %p12_p4 = scmp.ge.s32.totalorder %s377_s12, 4   ;;  %s496_s6 = smov %s330_s7 }
  0x54   : > { %s497_s7 = smov %s334_s8  ;;  %s498_s8 = smov %s388_s15 }
  0x55   : > { %s499_s9 = smov %s377_s12  ;;  %14 = sbr.rel (!%p12_p4) target bundleno = 4 (0x4), region = 61 }
  0x5c   :  { %143 = vsyncpa [#allocation3], 1 }
  0x5d   :  { %145 = vsyncpa [#allocation3 + $0x1], 1 }
  0x5e   :  { %146 = vsyncpa [#allocation4], 1 }
  0x5f   :  { %148 = vsyncpa [#allocation4 + $0x1], 1 }

// kernel: attention_transformer_forward.12
= control target key start
LH: loop header
LB: loop body
LE: loop exit
PB: predicated region body
PF: predicated region fallthrough
CT: control target
= control target key end

     0   :  { %v285_v0 = vmov 0.0   ;;  %vm286_vm0 = vmmov 0   ;;  %vm57_vm1 = vcmask 261120   ;;  %vm229_vm2 = vcmask 257024   ;;  %s366_s1 = inlined_call_operand.vmem [shape: bf16[32,32], index: 1, kind: input, shape index: {}]   ;;  %s367_s0 = inlined_call_operand.vmem [shape: bf16[16,32], index: 0, kind: input, shape index: {}]   ;;  %s368_s3 = inlined_call_operand.vmem [shape: bf16[32,32], index: 3, kind: input, shape index: {}]   ;;  %s369_s2 = inlined_call_operand.vmem [shape: f32[1,32], index: 2, kind: input, shape index: {}]   ;;  %s370_s4 = inlined_call_operand.vmem [shape: f32[1,32], index: 4, kind: input, shape index: {}]   ;;  %s371_s5 = inlined_call_operand.vmem [shape: f32[1,32], index: 5, kind: input, shape index: {}]   ;;  %s372_s6 = inlined_call_operand.vmem [shape: f32[1,32], index: 6, kind: input, shape index: {}]   ;;  %s373_s7 = inlined_call_operand.vmem [shape: bf16[16,32], index: 7, kind: output, shape index: {}]  }
   0x1   :  { %257 = vmatprep.subr.bf16.mxu0 %v285_v0  ;;  %v275_v1 = vld [vmem:[%s366_s1] sm:$0xff]   ;;  %261 = vmatprep.mubr.msk.bf16.mxu0 %vm286_vm0, %v285_v0  ;;  %v276_v2 = vld [vmem:[%s366_s1 + $0x8] sm:$0xff]  }
   0x2   :  { %265 = vmatprep.subr.bf16.mxu1 %v285_v0  ;;  %269 = vmatprep.mubr.msk.bf16.mxu1 %vm286_vm0, %v285_v0  ;;  %v27_v3 = vld [vmem:[%s367_s0] sm:$0xff]   ;;  %v279_v5 = vld [vmem:[%s368_s3 + $0x8] sm:$0xff]  }
   0x3   :  { %258 = vmatpush3.bf16.msra.mxu0 %v275_v1  ;;  %v278_v4 = vld [vmem:[%s368_s3] sm:$0xff]   ;;  %v172_v17 = vunpack.c.l.bf16 %v27_v3  ;;  %v173_v21 = vunpack.c.h.bf16 %v27_v3 }
   0x4   :  { %259 = vmatprep.subr.bf16.mxu0 %v285_v0  ;;  %266 = vmatpush3.bf16.msra.mxu1 %v278_v4  ;;  %v236_v6 = vld [vmem:[%s369_s2] ss:$0 sm:$0xff] }
   0x5   :  { %267 = vmatprep.subr.bf16.mxu1 %v285_v0  ;;  %v241_v16 = vld [vmem:[%s370_s4] ss:$0 sm:$0xff] }
   0x6   :  { %v245_v46 = vld [vmem:[%s371_s5] ss:$0 sm:$0xff] }
   0x7   :  { %260 = vmatpush3.bf16.msra.mxu0 %v276_v2  ;;  %v246_v48 = vld [vmem:[%s372_s6] ss:$0 sm:$0xff] }
   0x8   :  { %268 = vmatpush3.bf16.msra.mxu1 %v279_v5 }
   0xa   :  { %262 = vmatmul.mubr.msk.bf16.vlgmr.msra.gmra.mrb[0].mxu0 %vm57_vm1, %v27_v3 }
  0xdd   :  { %v95_v7 = vpop.f32.mrb[0].mxu0 }
  0xde   :  { %v96_v8 = vadd.f32 %v236_v6, %v95_v7  ;;  %v263_v9 = vpop.f32.mrb[1].mxu0 }
  0xdf   :  { %v98_v10 = vpop.f32.mrb[2].mxu0 }
  0xe0   :  { %v99_v11 = vadd.f32 %v236_v6, %v98_v10  ;;  %v264_v12 = vpop.f32.mrb[3].mxu0  ;;  %v102_v13 = vmax.f32 %v96_v8, 0.0 }
  0xe2   :  { %v103_v14 = vmax.f32 %v99_v11, 0.0 }
  0xe4   :  { %v104_v15 = vpack.c.bf16 %v103_v14, %v102_v13 }
  0xe6   :  { %270 = vmatmul.mubr.msk.bf16.vlgmr.msra.gmra.mrb[0].mxu1 %vm57_vm1, %v104_v15 }
 0x1b9   :  { %v165_v18 = vpop.f32.mrb[0].mxu1 }
 0x1ba   :  { %v166_v19 = vadd.f32 %v241_v16, %v165_v18  ;;  %v271_v20 = vpop.f32.mrb[1].mxu1 }
 0x1bb   :  { %v168_v22 = vpop.f32.mrb[2].mxu1 }
 0x1bc   :  { %v169_v23 = vadd.f32 %v241_v16, %v168_v22  ;;  %v272_v24 = vpop.f32.mrb[3].mxu1  ;;  %v174_v25 = vadd.f32 %v172_v17, %v166_v19 }
 0x1be   :  { %v178_v26 = vsel %vm57_vm1, %v174_v25, 0.0  ;;  %v175_v27 = vadd.f32 %v173_v21, %v169_v23 }
 0x1bf   :  { %179 = vadd.xlane.f32.xlu0 %v178_v26 }
 0x1c0   :  { %v181_v28 = vsel %vm57_vm1, %v175_v27, 0.0 }
 0x1c3   :  { %182 = vadd.xlane.f32.xlu0 %v181_v28 }
 0x24c   :  { %v180_v29 = vpop.xlane.xlu0 %179 }
 0x24d   :  { %v185_v30 = vmul.f32 0.03125, %v180_v29 }
 0x24f   :  { %v187_v31 = vsub.f32 %v174_v25, %v185_v30 }
 0x250   :  { %v183_v32 = vpop.xlane.xlu0 %182 }
 0x251   :  { %v186_v33 = vmul.f32 0.03125, %v183_v32  ;;  %v189_v34 = vmul.f32 %v187_v31, %v187_v31 }
 0x253   :  { %v188_v35 = vsub.f32 %v175_v27, %v186_v33  ;;  %v191_v36 = vsel %vm57_vm1, %v189_v34, 0.0 }
 0x254   :  { %192 = vadd.xlane.f32.xlu1 %v191_v36 }
 0x255   :  { %v190_v37 = vmul.f32 %v188_v35, %v188_v35 }
 0x257   :  { %v194_v38 = vsel %vm57_vm1, %v190_v37, 0.0 }
 0x258   :  { %195 = vadd.xlane.f32.xlu1 %v194_v38 }
 0x2e1   :  { %v193_v39 = vpop.xlane.xlu1 %192 }
 0x2e2   :  { %v197_v40 = vmul.f32 0.03125, %v193_v39 }
 0x2e4   :  { %v199_v41 = vadd.f32 1e-05, %v197_v40 }
 0x2e5   :  { %v196_v42 = vpop.xlane.xlu1 %195 }
 0x2e6   :  { %281 = vrsqrt.f32 %v199_v41  ;;  %v198_v43 = vmul.f32 0.03125, %v196_v42 }
 0x2e8   :  { %v200_v44 = vadd.f32 1e-05, %v198_v43 }
 0x2ea   :  { %283 = vrsqrt.f32 %v200_v44 }
 0x2f0   :  { %v282_v45 = vpop.eup %281 }
 0x2f1   :  { %v203_v47 = vmul.f32 %v282_v45, %v187_v31 }
 0x2f3   :  { %v211_v49 = vmul.f32 %v245_v46, %v203_v47 }
 0x2f4   :  { %v284_v50 = vpop.eup %283 }
 0x2f5   :  { %v219_v51 = vadd.f32 %v246_v48, %v211_v49  ;;  %v204_v52 = vmul.f32 %v284_v50, %v188_v35 }
 0x2f7   :  { %v249_v53 = vpack.c.bf16 %v219_v51, %v219_v51  ;;  %v212_v54 = vmul.f32 %v245_v46, %v204_v52 }
 0x2f9   :  { %230 = vst.msk [vmem:[%s373_s7] sm:$0xf] %vm229_vm2, %v249_v53  ;;  %v220_v55 = vadd.f32 %v246_v48, %v212_v54 }
 0x2fb   :  { %v250_v56 = vpack.c.bf16 %v220_v55, %v220_v55 }
 0x2fd   :  { %231 = vst.msk [vmem:[%s373_s7 + $0x4] sm:$0xf] %vm229_vm2, %v250_v56 }

// kernel: attention_transformer_forward.11
= control target key start
LH: loop header
LB: loop body
LE: loop exit
PB: predicated region body
PF: predicated region fallthrough
CT: control target
= control target key end

     0   :  { %s1099_s17 = smov 0   ;;  %s1101_s18 = smov 0   ;;  %s1212_s0 = inlined_call_operand.vmem [shape: bf16[2,8,32], index: 0, kind: input, shape index: {}, may-alias: {0,1}]   ;;  %s1213_s1 = inlined_call_operand.vmem [shape: bf16[2,8,32], index: 1, kind: input, shape index: {}, may-alias: {0,1}]   ;;  %s1214_s2 = inlined_call_operand.vmem [shape: bf16[32,32], index: 2, kind: input, shape index: {}]   ;;  %s1215_s3 = inlined_call_operand.vmem [shape: f32[1,32], index: 3, kind: input, shape index: {}]   ;;  %s1216_s4 = inlined_call_operand.vmem [shape: bf16[32,64], index: 4, kind: input, shape index: {}]   ;;  %s1217_s5 = inlined_call_operand.vmem [shape: f32[1,64], index: 5, kind: input, shape index: {}]   ;;  %s1218_s6 = inlined_call_operand.vmem [shape: bf16[32,32], index: 6, kind: input, shape index: {}]   ;;  %s1219_s7 = inlined_call_operand.vmem [shape: f32[1,32], index: 7, kind: input, shape index: {}]   ;;  %s1220_s8 = inlined_call_operand.vmem [shape: f32[2,1,8], index: 8, kind: input, shape index: {}]   ;;  %s1221_s9 = inlined_call_operand.vmem [shape: f32[1,32], index: 9, kind: input, shape index: {}]   ;;  %s1222_s10 = inlined_call_operand.vmem [shape: f32[1,32], index: 10, kind: input, shape index: {}]   ;;  %s1223_s11 = inlined_call_operand.vmem [shape: bf16[2,8,32], index: 11, kind: output, shape index: {}]  }
   0x1   :  { %s1103_s19 = smov 0  }
   0x2 LB: > { %s33_s20 = sadd.s32 1, %s1030_s18  ;;  %p901_p0 = scmp.ge.s32.totalorder %s1034_s19, 1  ;;  %s1034_s19 = sphi %s1103_s19, %s21_s19   ;;  %s1030_s18 = sphi %s1101_s18, %s1225_s18   ;;  %s1026_s17 = sphi %s1099_s17, %s1224_s17  }
   0x3   : > { %p35_p1 = scmp.ge.s32.totalorder %s33_s20, 2  ;;  %p372_p2 = scmp.lt.s32.totalorder %s1034_s19, 3 }
   0x5   : > { %s1227_s20 = smov (%p35_p1, %s33_s20), 0  ;;  %p373_p3 = pnand %p901_p0, %p372_p2 }
   0x6   : > { %v1000_v0 = vld [vmem:[%s1216_s4] sm:$0xff] (!%p373_p3)   ;;  %v1036_v1 = vmov (!%p373_p3), 0.0   ;;  %v1001_v2 = vld [vmem:[%s1216_s4 + $0x8] sm:$0xff] (!%p373_p3)   ;;  %vm1037_vm0 = vmmov (!%p373_p3), 0   ;;  %p423_p4 = scmp.lt.s32.totalorder (!%p373_p3), %s1026_s17, 1  ;;  %vm470_vm1 = vcmask (!%p373_p3), 261120  }
   0x7   : > { %376 = sbr.rel (%p373_p3) target bundleno = 1520 (0x5f0), region = 64  ;;  %945 = vmatprep.subr.bf16.mxu1 (!%p373_p3), %v1036_v1  ;;  %937 = vmatprep.subr.bf16.mxu0 (!%p373_p3), %v1036_v1  ;;  %v1002_v3 = vld [vmem:[%s1214_s2] sm:$0xff] (!%p373_p3)   ;;  %v1003_v4 = vld [vmem:[%s1214_s2 + $0x8] sm:$0xff] (!%p373_p3)   ;;  %s1038_s25 = smov (!%p373_p3), 96   ;;  %vm656_vm2 = vcmask (!%p373_p3), 1043456   ;;  %vm637_vm3 = vcmask (!%p373_p3), 64512  }
   0x8   : > { %946 = vmatpush3.bf16.msra.mxu1 (!%p373_p3), %v1000_v0  ;;  %949 = vmatprep.mubr.msk.bf16.mxu1 (!%p373_p3), %vm1037_vm0, %v1036_v1  ;;  %v909_v7 = vld [vmem:[%s1217_s5] ss:$0 sm:$0xff] (!%p373_p3)  ;;  %v1005_v42 = vld [vmem:[%s1218_s6 + $0x8] sm:$0xff] (!%p373_p3)   ;;  %vm800_vm4 = vcmask (!%p373_p3), 257024  }
   0x9   : > { %947 = vmatprep.subr.bf16.mxu1 (!%p373_p3), %v1036_v1  ;;  %941 = vmatprep.mubr.msk.bf16.mxu0 (!%p373_p3), %vm1037_vm0, %v1036_v1  ;;  %v905_v12 = vld [vmem:[%s1215_s3] ss:$0 sm:$0xff] (!%p373_p3) }
   0xa   : > { %938 = vmatpush3.bf16.msra.mxu0 (!%p373_p3), %v1002_v3  ;;  %v1004_v37 = vld [vmem:[%s1218_s6] sm:$0xff] (!%p373_p3)  }
   0xb   : > { %939 = vmatprep.subr.bf16.mxu0 (!%p373_p3), %v1036_v1  ;;  %v916_v48 = vld [vmem:[%s1219_s7] ss:$0 sm:$0xff] (!%p373_p3) }
   0xc   : > { %948 = vmatpush3.bf16.msra.mxu1 (!%p373_p3), %v1001_v2  ;;  %v920_v2 = vld [vmem:[%s1221_s9] ss:$0 sm:$0xff] (!%p373_p3) }
   0xd   : > { %959 = vmatprep.subr.bf16.mxu1 (!%p373_p3), %v1036_v1 }
   0xe   : > { %s1229_s17 = smov (!%p423_p4, %s1026_s17), 1  ;;  %940 = vmatpush3.bf16.msra.mxu0 %v1003_v4  ;;  %v921_v4 = vld [vmem:[%s1222_s10] ss:$0 sm:$0xff] }
   0xf   : > { %s1140_s29 = sshll.u32 %s1229_s17, 2  ;;  %953 = vmatprep.subr.bf16.mxu0 %v1036_v1  ;;  %s436_s28 = scalar_lea.vmem %s1220_s8, %s1229_s17 }
  0x10   : > { %s433_s13 = scalar_lea.vmem %s1213_s1, %s1140_s29  ;;  %s429_s16 = scalar_lea.vmem %s1212_s0, %s1140_s29  ;;  %v914_v25 = vld [vmem:[%s436_s28] ss:$0 sm:$0xff] }
  0x11   : > { %v446_v5 = vld [vmem:[%s433_s13] sm:$0xf]  ;;  %s443_s26 = scalar_lea.vmem %s1223_s11, %s1140_s29 }
  0x12   : > { %950 = vmatmul.mubr.msk.bf16.vlgmr.msra.gmra.mrb[0].mxu1 %vm470_vm1, %v446_v5  ;;  %v1152_v6 = vld [vmem:[%s429_s16] sm:$0xf] }
  0x13   : > { %961 = vmatprep.mubr.msk.bf16.mxu1 %vm1037_vm0, %v1036_v1  ;;  %942 = vmatmul.mubr.msk.bf16.vlgmr.msra.gmra.mrb[0].mxu0 %vm470_vm1, %v1152_v6  ;;  %v767_v49 = vunpack.c.l.bf16 %v1152_v6 }
  0x14   : > { %955 = vmatprep.mubr.msk.bf16.mxu0 %vm1037_vm0, %v1036_v1 }
  0xe5   : > { %v574_v8 = vpop.f32.mrb[0].mxu1 }
  0xe6   : > { %v575_v9 = vadd.f32 %v909_v7, %v574_v8  ;;  %v951_v10 = vpop.f32.mrb[1].mxu1  ;;  %v508_v13 = vpop.f32.mrb[0].mxu0 }
  0xe7   : > { %v577_v11 = vpop.f32.mrb[2].mxu1  ;;  %v943_v16 = vpop.f32.mrb[1].mxu0  ;;  %v509_v19 = vadd.f32 %v905_v12, %v508_v13 }
  0xe8   : > { %v581_v14 = vpack.c.bf16 %v575_v9, %v575_v9  ;;  %v952_v15 = vpop.f32.mrb[3].mxu1  ;;  %v511_v17 = vpop.f32.mrb[2].mxu0 }
  0xe9   : > { %v944_v20 = vpop.f32.mrb[3].mxu0  ;;  %v580_v21 = vpack.c.bf16 %v509_v19, %v509_v19 }
  0xea   : > { %v586_v18 = vsel %vm470_vm1, %v581_v14, 0  ;;  %651 = vrot.lane.b32.xlu1 %v581_v14, %s1038_s25 }
  0xeb   : > { %954 = vmatpush3.bf16.xpose.msra.mxu0 %v586_v18 }
  0xec   : > { %965 = vmatprep.subr.bf16.mxu0 %v1036_v1 }
  0xf2   : > { %956 = vmatmul.mubr.msk.bf16.vlgmr.msra.gmra.mrb[4].mxu0 %vm470_vm1, %v580_v21 }
  0xf3   : > { %969 = vmatprep.mubr.msk.bf16.mxu0 %vm1037_vm0, %v1036_v1  ;;  %966 = vmatpush3.bf16.msra.mxu0 %v1004_v37 }
  0xf4   : > { %967 = vmatprep.subr.bf16.mxu0 %v1036_v1 }
  0xf7   : > { %968 = vmatpush3.bf16.msra.mxu0 %v1005_v42 }
 0x15c   : > { %v652_v22 = vpop.permute.xlu1 %651 }
 0x15d   : > { %v658_v23 = vsel %vm656_vm2, %v652_v22, 0 }
 0x15e   : > { %960 = vmatpush3.bf16.msra.mxu1 %v658_v23 }
 0x1c5   : > { %v622_v24 = vpop.f32.mrb[4].mxu0 }
 0x1c6   : > { %v628_v26 = vmul.f32 0.17677669, %v622_v24  ;;  %v957_v27 = vpop.f32.mrb[5].mxu0 }
 0x1c7   : > { %v625_v28 = vpop.f32.mrb[6].mxu0 }
 0x1c8   : > { %v958_v29 = vpop.f32.mrb[7].mxu0  ;;  %v636_v30 = vadd.f32 %v914_v25, %v628_v26 }
 0x1ca   : > { %v638_v31 = vsel %vm637_vm3, %v636_v30, -inf }
 0x1cb   : > { %639 = vmax.xlane.f32.xlu0 %v638_v31 }
 0x258   : > { %v640_v32 = vpop.xlane.xlu0 %639 }
 0x259   : > { %v641_v33 = vsub.f32 %v636_v30, %v640_v32 }
 0x25b   : > { %v642_v34 = vmul.f32 1.442695, %v641_v33 }
 0x25d   : > { %1006 = vpow2.f32 %v642_v34 }
 0x267   : > { %v1007_v35 = vpop.eup %1006 }
 0x268   : > { %v644_v36 = vsel %vm637_vm3, %v1007_v35, 0.0 }
 0x269   : > { %645 = vadd.xlane.f32.xlu0 %v644_v36 }
 0x2f6   : > { %v646_v38 = vpop.xlane.xlu0 %645 }
 0x2f7   : > { %1008 = vrcp.f32 %v646_v38 }
 0x301   : > { %v1009_v39 = vpop.eup %1008 }
 0x302   : > { %v648_v40 = vmul.f32 %v1009_v39, %v1007_v35 }
 0x304   : > { %v649_v41 = vpack.c.bf16 %v648_v40, %v648_v40 }
 0x306   : > { %962 = vmatmul.mubr.msk.bf16.vlgmr.msra.gmra.mrb[4].mxu1 %vm637_vm3, %v649_v41 }
 0x3d9   : > { %v694_v43 = vpop.f32.mrb[4].mxu1 }
 0x3da   : > { %v700_v44 = vpack.c.bf16 %v694_v43, %v694_v43  ;;  %v963_v45 = vpop.f32.mrb[5].mxu1 }
 0x3db   : > { %v697_v46 = vpop.f32.mrb[6].mxu1 }
 0x3dc   : > { %v964_v47 = vpop.f32.mrb[7].mxu1  ;;  %970 = vmatmul.mubr.msk.bf16.vlgmr.msra.gmra.mrb[8].mxu0 %vm470_vm1, %v700_v44 }
 0x4af   : > { %v761_v50 = vpop.f32.mrb[8].mxu0 }
 0x4b0   : > { %v762_v51 = vadd.f32 %v916_v48, %v761_v50  ;;  %v971_v52 = vpop.f32.mrb[9].mxu0 }
 0x4b1   : > { %v764_v53 = vpop.f32.mrb[10].mxu0 }
 0x4b2   : > { %v972_v54 = vpop.f32.mrb[11].mxu0  ;;  %v768_v55 = vadd.f32 %v767_v49, %v762_v51 }
 0x4b4   : > { %v771_v56 = vsel %vm470_vm1, %v768_v55, 0.0 }
 0x4b5   : > { %772 = vadd.xlane.f32.xlu1 %v771_v56 }
 0x542   : > { %v773_v57 = vpop.xlane.xlu1 %772 }
 0x543   : > { %v775_v58 = vmul.f32 0.03125, %v773_v57 }
 0x545   : > { %v776_v59 = vsub.f32 %v768_v55, %v775_v58 }
 0x547   : > { %v777_v60 = vmul.f32 %v776_v59, %v776_v59 }
 0x549   : > { %v778_v61 = vsel %vm470_vm1, %v777_v60, 0.0 }
 0x54a   : > { %779 = vadd.xlane.f32.xlu0 %v778_v61 }
 0x5d7   : > { %v780_v62 = vpop.xlane.xlu0 %779 }
 0x5d8   : > { %v781_v63 = vmul.f32 0.03125, %v780_v62 }
 0x5da   : > { %v782_v0 = vadd.f32 1e-05, %v781_v63 }
 0x5dc   : > { %1010 = vrsqrt.f32 %v782_v0 }
 0x5e6   : > { %v1011_v1 = vpop.eup %1010 }
 0x5e7   : > { %v784_v3 = vmul.f32 %v1011_v1, %v776_v59 }
 0x5e9   : > { %v791_v5 = vmul.f32 %v920_v2, %v784_v3 }
 0x5eb   : > { %v798_v6 = vadd.f32 %v921_v4, %v791_v5 }
 0x5ed   : > { %v799_v7 = vpack.c.bf16 %v798_v6, %v798_v6 }
 0x5ef   : > { %801 = vst.msk [vmem:[%s443_s26] sm:$0xf] %vm800_vm4, %v799_v7 }
 0x5f0 PF: > { %s21_s19 = sadd.s32 1, %s1034_s19   ;;  %s1224_s17 = smov %s1030_s18 }
 0x5f1   : > { %p18_p5 = scmp.ge.s32.totalorder %s21_s19, 4   ;;  %s1225_s18 = smov %s1227_s20 }
 0x5f3   :  { %20 = sbr.rel (!%p18_p5) target bundleno = 2 (0x2), region = 100 }

// kernel: attention_transformer_forward.15
= control target key start
LH: loop header
LB: loop body
LE: loop exit
PB: predicated region body
PF: predicated region fallthrough
CT: control target
= control target key end

     0   :  { %s1108_s17 = smov 0   ;;  %s1110_s18 = smov 0   ;;  %s1221_s0 = inlined_call_operand.vmem [shape: bf16[2,8,32], index: 0, kind: input, shape index: {}, may-alias: {0,1}]   ;;  %s1222_s1 = inlined_call_operand.vmem [shape: bf16[2,8,32], index: 1, kind: input, shape index: {}, may-alias: {0,1}]   ;;  %s1223_s2 = inlined_call_operand.vmem [shape: bf16[32,32], index: 2, kind: input, shape index: {}]   ;;  %s1224_s3 = inlined_call_operand.vmem [shape: f32[1,32], index: 3, kind: input, shape index: {}]   ;;  %s1225_s4 = inlined_call_operand.vmem [shape: bf16[32,64], index: 4, kind: input, shape index: {}]   ;;  %s1226_s5 = inlined_call_operand.vmem [shape: f32[1,64], index: 5, kind: input, shape index: {}]   ;;  %s1227_s6 = inlined_call_operand.vmem [shape: bf16[32,32], index: 6, kind: input, shape index: {}]   ;;  %s1228_s7 = inlined_call_operand.vmem [shape: f32[1,32], index: 7, kind: input, shape index: {}]   ;;  %s1229_s8 = inlined_call_operand.vmem [shape: f32[2,1,8], index: 8, kind: input, shape index: {}]   ;;  %s1230_s9 = inlined_call_operand.vmem [shape: f32[1,32], index: 9, kind: input, shape index: {}]   ;;  %s1231_s10 = inlined_call_operand.vmem [shape: f32[1,32], index: 10, kind: input, shape index: {}]   ;;  %s1232_s11 = inlined_call_operand.vmem [shape: bf16[2,8,32], index: 11, kind: output, shape index: {}]  }
   0x1   :  { %s1112_s19 = smov 0  }
   0x2 LB: > { %s33_s20 = sadd.s32 1, %s1039_s18  ;;  %p910_p0 = scmp.ge.s32.totalorder %s1043_s19, 1  ;;  %s1043_s19 = sphi %s1112_s19, %s21_s19   ;;  %s1039_s18 = sphi %s1110_s18, %s1234_s18   ;;  %s1035_s17 = sphi %s1108_s17, %s1233_s17  }
   0x3   : > { %p35_p1 = scmp.ge.s32.totalorder %s33_s20, 2  ;;  %p372_p2 = scmp.lt.s32.totalorder %s1043_s19, 3 }
   0x5   : > { %s1236_s20 = smov (%p35_p1, %s33_s20), 0  ;;  %p373_p3 = pnand %p910_p0, %p372_p2 }
   0x6   : > { %v1009_v0 = vld [vmem:[%s1225_s4] sm:$0xff] (!%p373_p3)   ;;  %v1045_v1 = vmov (!%p373_p3), 0.0   ;;  %v1010_v2 = vld [vmem:[%s1225_s4 + $0x8] sm:$0xff] (!%p373_p3)   ;;  %vm1046_vm0 = vmmov (!%p373_p3), 0   ;;  %p423_p4 = scmp.lt.s32.totalorder (!%p373_p3), %s1035_s17, 1  ;;  %vm470_vm1 = vcmask (!%p373_p3), 261120   ;;  %v638_v24 = vlaneseq (!%p373_p3) }
   0x7   : > { %376 = sbr.rel (%p373_p3) target bundleno = 1521 (0x5f1), region = 64  ;;  %954 = vmatprep.subr.bf16.mxu1 (!%p373_p3), %v1045_v1  ;;  %946 = vmatprep.subr.bf16.mxu0 (!%p373_p3), %v1045_v1  ;;  %v1011_v3 = vld [vmem:[%s1223_s2] sm:$0xff] (!%p373_p3)   ;;  %v1012_v4 = vld [vmem:[%s1223_s2 + $0x8] sm:$0xff] (!%p373_p3)   ;;  %s1047_s25 = smov (!%p373_p3), 96   ;;  %vm665_vm2 = vcmask (!%p373_p3), 1043456   ;;  %vm646_vm4 = vcmask (!%p373_p3), 64512  }
   0x8   : > { %955 = vmatpush3.bf16.msra.mxu1 (!%p373_p3), %v1009_v0  ;;  %958 = vmatprep.mubr.msk.bf16.mxu1 (!%p373_p3), %vm1046_vm0, %v1045_v1  ;;  %v918_v7 = vld [vmem:[%s1226_s5] ss:$0 sm:$0xff] (!%p373_p3)  ;;  %v639_v25 = vshrl.u32 (!%p373_p3), %v638_v24, 7  ;;  %v643_v26 = vand.u32 (!%p373_p3), 127, %v638_v24  ;;  %v1014_v46 = vld [vmem:[%s1227_s6 + $0x8] sm:$0xff] (!%p373_p3)   ;;  %vm809_vm5 = vcmask (!%p373_p3), 257024  }
   0x9   : > { %956 = vmatprep.subr.bf16.mxu1 (!%p373_p3), %v1045_v1  ;;  %950 = vmatprep.mubr.msk.bf16.mxu0 (!%p373_p3), %vm1046_vm0, %v1045_v1  ;;  %v914_v12 = vld [vmem:[%s1224_s3] ss:$0 sm:$0xff] (!%p373_p3) }
   0xa   : > { %947 = vmatpush3.bf16.msra.mxu0 (!%p373_p3), %v1011_v3  ;;  %vm644_vm3 = vcmp.ge.s32.totalorder (!%p373_p3), %v639_v25, %v643_v26  ;;  %v1013_v41 = vld [vmem:[%s1227_s6] sm:$0xff] (!%p373_p3)  }
   0xb   : > { %948 = vmatprep.subr.bf16.mxu0 (!%p373_p3), %v1045_v1  ;;  %v925_v52 = vld [vmem:[%s1228_s7] ss:$0 sm:$0xff] (!%p373_p3) }
   0xc   : > { %957 = vmatpush3.bf16.msra.mxu1 (!%p373_p3), %v1010_v2 }
   0xd   : > { %968 = vmatprep.subr.bf16.mxu1 (!%p373_p3), %v1045_v1 }
   0xe   : > { %s1238_s17 = smov (!%p423_p4, %s1035_s17), 1  ;;  %949 = vmatpush3.bf16.msra.mxu0 %v1012_v4 }
   0xf   : > { %s1149_s29 = sshll.u32 %s1238_s17, 2  ;;  %962 = vmatprep.subr.bf16.mxu0 %v1045_v1  ;;  %s436_s28 = scalar_lea.vmem %s1229_s8, %s1238_s17 }
  0x10   : > { %s433_s13 = scalar_lea.vmem %s1222_s1, %s1149_s29  ;;  %s429_s16 = scalar_lea.vmem %s1221_s0, %s1149_s29  ;;  %v923_v28 = vld [vmem:[%s436_s28] ss:$0 sm:$0xff] }
  0x11   : > { %v446_v5 = vld [vmem:[%s433_s13] sm:$0xf]  ;;  %s443_s26 = scalar_lea.vmem %s1232_s11, %s1149_s29 }
  0x12   : > { %959 = vmatmul.mubr.msk.bf16.vlgmr.msra.gmra.mrb[0].mxu1 %vm470_vm1, %v446_v5  ;;  %v1161_v6 = vld [vmem:[%s429_s16] sm:$0xf] }
  0x13   : > { %970 = vmatprep.mubr.msk.bf16.mxu1 %vm1046_vm0, %v1045_v1  ;;  %951 = vmatmul.mubr.msk.bf16.vlgmr.msra.gmra.mrb[0].mxu0 %vm470_vm1, %v1161_v6  ;;  %v776_v53 = vunpack.c.l.bf16 %v1161_v6  ;;  %v929_v6 = vld [vmem:[%s1230_s9] ss:$0 sm:$0xff] }
  0x14   : > { %964 = vmatprep.mubr.msk.bf16.mxu0 %vm1046_vm0, %v1045_v1 }
  0xe5   : > { %v574_v8 = vpop.f32.mrb[0].mxu1 }
  0xe6   : > { %v575_v9 = vadd.f32 %v918_v7, %v574_v8  ;;  %v960_v10 = vpop.f32.mrb[1].mxu1  ;;  %v508_v13 = vpop.f32.mrb[0].mxu0  ;;  %v930_v8 = vld [vmem:[%s1231_s10] ss:$0 sm:$0xff] }
  0xe7   : > { %v577_v11 = vpop.f32.mrb[2].mxu1  ;;  %v952_v16 = vpop.f32.mrb[1].mxu0  ;;  %v509_v19 = vadd.f32 %v914_v12, %v508_v13 }
  0xe8   : > { %v581_v14 = vpack.c.bf16 %v575_v9, %v575_v9  ;;  %v961_v15 = vpop.f32.mrb[3].mxu1  ;;  %v511_v17 = vpop.f32.mrb[2].mxu0 }
  0xe9   : > { %v953_v20 = vpop.f32.mrb[3].mxu0  ;;  %v580_v21 = vpack.c.bf16 %v509_v19, %v509_v19 }
  0xea   : > { %v586_v18 = vsel %vm470_vm1, %v581_v14, 0  ;;  %660 = vrot.lane.b32.xlu1 %v581_v14, %s1047_s25 }
  0xeb   : > { %963 = vmatpush3.bf16.xpose.msra.mxu0 %v586_v18 }
  0xec   : > { %974 = vmatprep.subr.bf16.mxu0 %v1045_v1 }
  0xf2   : > { %965 = vmatmul.mubr.msk.bf16.vlgmr.msra.gmra.mrb[4].mxu0 %vm470_vm1, %v580_v21 }
  0xf3   : > { %978 = vmatprep.mubr.msk.bf16.mxu0 %vm1046_vm0, %v1045_v1  ;;  %975 = vmatpush3.bf16.msra.mxu0 %v1013_v41 }
  0xf4   : > { %976 = vmatprep.subr.bf16.mxu0 %v1045_v1 }
  0xf7   : > { %977 = vmatpush3.bf16.msra.mxu0 %v1014_v46 }
 0x15c   : > { %v661_v22 = vpop.permute.xlu1 %660 }
 0x15d   : > { %v667_v23 = vsel %vm665_vm2, %v661_v22, 0 }
 0x15e   : > { %969 = vmatpush3.bf16.msra.mxu1 %v667_v23 }
 0x1c5   : > { %v622_v27 = vpop.f32.mrb[4].mxu0 }
 0x1c6   : > { %v628_v29 = vmul.f32 0.17677669, %v622_v27  ;;  %v966_v30 = vpop.f32.mrb[5].mxu0 }
 0x1c7   : > { %v625_v31 = vpop.f32.mrb[6].mxu0 }
 0x1c8   : > { %v636_v32 = vadd.f32 %v923_v28, %v628_v29  ;;  %v967_v33 = vpop.f32.mrb[7].mxu0 }
 0x1ca   : > { %v645_v34 = vsel %vm644_vm3, %v636_v32, -1e+10 }
 0x1cb   : > { %v647_v35 = vsel %vm646_vm4, %v645_v34, -inf }
 0x1cc   : > { %648 = vmax.xlane.f32.xlu0 %v647_v35 }
 0x259   : > { %v649_v36 = vpop.xlane.xlu0 %648 }
 0x25a   : > { %v650_v37 = vsub.f32 %v645_v34, %v649_v36 }
 0x25c   : > { %v651_v38 = vmul.f32 1.442695, %v650_v37 }
 0x25e   : > { %1015 = vpow2.f32 %v651_v38 }
 0x268   : > { %v1016_v39 = vpop.eup %1015 }
 0x269   : > { %v653_v40 = vsel %vm646_vm4, %v1016_v39, 0.0 }
 0x26a   : > { %654 = vadd.xlane.f32.xlu0 %v653_v40 }
 0x2f7   : > { %v655_v42 = vpop.xlane.xlu0 %654 }
 0x2f8   : > { %1017 = vrcp.f32 %v655_v42 }
 0x302   : > { %v1018_v43 = vpop.eup %1017 }
 0x303   : > { %v657_v44 = vmul.f32 %v1018_v43, %v1016_v39 }
 0x305   : > { %v658_v45 = vpack.c.bf16 %v657_v44, %v657_v44 }
 0x307   : > { %971 = vmatmul.mubr.msk.bf16.vlgmr.msra.gmra.mrb[4].mxu1 %vm646_vm4, %v658_v45 }
 0x3da   : > { %v703_v47 = vpop.f32.mrb[4].mxu1 }
 0x3db   : > { %v709_v48 = vpack.c.bf16 %v703_v47, %v703_v47  ;;  %v972_v49 = vpop.f32.mrb[5].mxu1 }
 0x3dc   : > { %v706_v50 = vpop.f32.mrb[6].mxu1 }
 0x3dd   : > { %v973_v51 = vpop.f32.mrb[7].mxu1  ;;  %979 = vmatmul.mubr.msk.bf16.vlgmr.msra.gmra.mrb[8].mxu0 %vm470_vm1, %v709_v48 }
 0x4b0   : > { %v770_v54 = vpop.f32.mrb[8].mxu0 }
 0x4b1   : > { %v771_v55 = vadd.f32 %v925_v52, %v770_v54  ;;  %v980_v56 = vpop.f32.mrb[9].mxu0 }
 0x4b2   : > { %v773_v57 = vpop.f32.mrb[10].mxu0 }
 0x4b3   : > { %v981_v58 = vpop.f32.mrb[11].mxu0  ;;  %v777_v59 = vadd.f32 %v776_v53, %v771_v55 }
 0x4b5   : > { %v780_v60 = vsel %vm470_vm1, %v777_v59, 0.0 }
 0x4b6   : > { %781 = vadd.xlane.f32.xlu1 %v780_v60 }
 0x543   : > { %v782_v61 = vpop.xlane.xlu1 %781 }
 0x544   : > { %v784_v62 = vmul.f32 0.03125, %v782_v61 }
 0x546   : > { %v785_v63 = vsub.f32 %v777_v59, %v784_v62 }
 0x548   : > { %v786_v0 = vmul.f32 %v785_v63, %v785_v63 }
 0x54a   : > { %v787_v1 = vsel %vm470_vm1, %v786_v0, 0.0 }
 0x54b   : > { %788 = vadd.xlane.f32.xlu0 %v787_v1 }
 0x5d8   : > { %v789_v2 = vpop.xlane.xlu0 %788 }
 0x5d9   : > { %v790_v3 = vmul.f32 0.03125, %v789_v2 }
 0x5db   : > { %v791_v4 = vadd.f32 1e-05, %v790_v3 }
 0x5dd   : > { %1019 = vrsqrt.f32 %v791_v4 }
 0x5e7   : > { %v1020_v5 = vpop.eup %1019 }
 0x5e8   : > { %v793_v7 = vmul.f32 %v1020_v5, %v785_v63 }
 0x5ea   : > { %v800_v9 = vmul.f32 %v929_v6, %v793_v7 }
 0x5ec   : > { %v807_v10 = vadd.f32 %v930_v8, %v800_v9 }
 0x5ee   : > { %v808_v11 = vpack.c.bf16 %v807_v10, %v807_v10 }
 0x5f0   : > { %810 = vst.msk [vmem:[%s443_s26] sm:$0xf] %vm809_vm5, %v808_v11 }
 0x5f1 PF: > { %s21_s19 = sadd.s32 1, %s1043_s19   ;;  %s1233_s17 = smov %s1039_s18 }
 0x5f2   : > { %p18_p5 = scmp.ge.s32.totalorder %s21_s19, 4   ;;  %s1234_s18 = smov %s1236_s20 }
 0x5f4   :  { %20 = sbr.rel (!%p18_p5) target bundleno = 2 (0x2), region = 100 }

// kernel: attention_transformer_forward.19
= control target key start
LH: loop header
LB: loop body
LE: loop exit
PB: predicated region body
PF: predicated region fallthrough
CT: control target
= control target key end

     0   :  { %s1486_s0 = inlined_call_operand.vmem [shape: bf16[2,8,32], index: 0, kind: input, shape index: {}]   ;;  %s1487_s1 = inlined_call_operand.vmem [shape: bf16[2,8,32], index: 1, kind: input, shape index: {}]   ;;  %s1488_s2 = inlined_call_operand.vmem [shape: bf16[32,32], index: 2, kind: input, shape index: {}]   ;;  %s1489_s3 = inlined_call_operand.vmem [shape: f32[1,32], index: 3, kind: input, shape index: {}]   ;;  %s1490_s4 = inlined_call_operand.vmem [shape: bf16[32,64], index: 4, kind: input, shape index: {}]   ;;  %s1491_s5 = inlined_call_operand.vmem [shape: f32[1,64], index: 5, kind: input, shape index: {}]   ;;  %s1492_s6 = inlined_call_operand.vmem [shape: bf16[32,32], index: 6, kind: input, shape index: {}]   ;;  %s1493_s7 = inlined_call_operand.vmem [shape: f32[1,32], index: 7, kind: input, shape index: {}]   ;;  %s1494_s8 = inlined_call_operand.vmem [shape: f32[2,1,8], index: 8, kind: input, shape index: {}]   ;;  %s1495_s9 = inlined_call_operand.vmem [shape: f32[1,32], index: 9, kind: input, shape index: {}]   ;;  %s1496_s10 = inlined_call_operand.vmem [shape: f32[1,32], index: 10, kind: input, shape index: {}]   ;;  %s1497_s11 = inlined_call_operand.vmem [shape: bf16[2,8,32], index: 11, kind: output, shape index: {0}]   ;;  %s1498_s12 = inlined_call_operand.hbm [shape: bf16[2,1,8,8], index: 12, kind: output, shape index: {1}]  }
   0x1   :  { %1499 = sst [smem:[#allocation5_spill]] %s1486_s0 }
   0x2   :  { %1500 = sst [smem:[#allocation6_spill]] %s1487_s1 }
   0x3   :  { %1501 = sst [smem:[#allocation7_spill]] %s1488_s2 }
   0x4   :  { %1502 = sst [smem:[#allocation8_spill]] %s1489_s3 }
   0x5   :  { %1503 = sst [smem:[#allocation9_spill]] %s1490_s4 }
   0x6   :  { %18 = vsyncpa [#allocation3], 0 }
   0x7   :  { %20 = vsyncpa [#allocation3 + $0x1], 0  ;;  %s1290_s21 = smov 0   ;;  %s1292_s22 = smov 0  }
   0x8   :  { %s1294_s23 = smov 0   ;;  %s1296_s24 = smov 0  }
   0x9   :  { %s1298_s25 = smov 0   ;;  %s1300_s26 = smov 0  }
   0xa LB: > { %s992_s27 = sadd.s32 4294967295, %s1219_s26   ;;  %s993_s28 = sadd.s32 4294967294, %s1219_s26   ;;  %s1219_s26 = sphi %s1300_s26, %s26_s26   ;;  %s1215_s25 = sphi %s1298_s25, %s1515_s25   ;;  %s1211_s24 = sphi %s1296_s24, %s1514_s24   ;;  %s1207_s23 = sphi %s1294_s23, %s1513_s23   ;;  %s1203_s22 = sphi %s1292_s22, %s1512_s22   ;;  %s1199_s21 = sphi %s1290_s21, %s1511_s21  }
   0xb   : > { %s38_s29 = sadd.s32 1, %s1215_s25  ;;  %s323_s30 = sadd.s32 1, %s1207_s23 }
   0xc   : > { %p40_p0 = scmp.ge.s32.totalorder %s38_s29, 2  ;;  %p333_p1 = scmp.ne.s32.totalorder %s1207_s23, %s1203_s22 }
   0xd   : > { %p334_p2 = scmp.eq.s32.totalorder %s992_s27, 1  ;;  %p339_p3 = scmp.ne.s32.totalorder %s1203_s22, %s1199_s21 }
   0xe   : > { %s1517_s29 = smov (%p40_p0, %s38_s29), 0  ;;  %p340_p5 = scmp.eq.s32.totalorder %s993_s28, 1 }
   0xf   : > { %p1330_p4 = por %p334_p2, %p333_p1  ;;  %s318_s14 = ssub.s32 %s1215_s25, %s1517_s29 }
  0x10   : > { %p996_p6 = scmp.ge.s32.totalorder %s1219_s26, 1  ;;  %p321_p7 = scmp.eq.s32.totalorder %s318_s14, 0 }
  0x11   : > { %p1337_p8 = por %p340_p5, %p339_p3  ;;  %p405_p9 = scmp.lt.s32.totalorder %s1219_s26, 3 }
  0x12   : > { %s1343_s16 = scalar_select %p321_p7, %s1207_s23, %s323_s30  }
  0x13   : > { %p406_p10 = pnand %p996_p6, %p405_p9 }
  0x14   : > { %s1506_s4 = sld [smem:[#allocation9_spill]] (!%p406_p10)  ;;  %v1221_v1 = vmov (!%p406_p10), 0.0   ;;  %s1507_s2 = sld [smem:[#allocation7_spill]] (!%p406_p10)  ;;  %vm1222_vm0 = vmmov (!%p406_p10), 0   ;;  %vm510_vm1 = vcmask (!%p406_p10), 261120   ;;  %vm698_vm2 = vcmask (!%p406_p10), 1043456  }
  0x15   : > { %409 = sbr.rel (%p406_p10) target bundleno = 1536 (0x600), region = 64  ;;  %1043 = vmatprep.subr.bf16.mxu1 (!%p406_p10), %v1221_v1  ;;  %1035 = vmatprep.subr.bf16.mxu0 (!%p406_p10), %v1221_v1  ;;  %p463_p11 = scmp.lt.s32.totalorder (!%p406_p10), %s1211_s24, 1  ;;  %v1005_v7 = vld [vmem:[%s1491_s5] ss:$0 sm:$0xff] (!%p406_p10)  ;;  %vm677_vm3 = vcmask (!%p406_p10), 64512   ;;  %vm690_vm4 = vcmask (!%p406_p10), 60416  }
  0x16   : > { %1047 = vmatprep.mubr.msk.bf16.mxu1 (!%p406_p10), %vm1222_vm0, %v1221_v1  ;;  %1039 = vmatprep.mubr.msk.bf16.mxu0 (!%p406_p10), %vm1222_vm0, %v1221_v1  ;;  %s1508_s1 = sld [smem:[#allocation6_spill]] (!%p406_p10)  ;;  %s1509_s0 = sld [smem:[#allocation5_spill]] (!%p406_p10)  ;;  %v1133_v37 = vld [vmem:[%s1492_s6] sm:$0xff] (!%p406_p10)   ;;  %v1134_v42 = vld [vmem:[%s1492_s6 + $0x8] sm:$0xff] (!%p406_p10)  }
  0x17   : > { %s1510_s3 = sld [smem:[#allocation8_spill]] (!%p406_p10)  ;;  %s1223_s14 = smov (!%p406_p10), 96   ;;  %v1012_v48 = vld [vmem:[%s1493_s7] ss:$0 sm:$0xff] (!%p406_p10) }
  0x18   : > { %s460_s28 = sand.u32 (!%p406_p10), 1, %s1203_s22  }
  0x1a   : > { %v1129_v0 = vld [vmem:[%s1506_s4] sm:$0xff] (!%p406_p10)   ;;  %v1130_v2 = vld [vmem:[%s1506_s4 + $0x8] sm:$0xff] (!%p406_p10)  }
  0x1b   : > { %1044 = vmatpush3.bf16.msra.mxu1 (!%p406_p10), %v1129_v0  ;;  %v1131_v3 = vld [vmem:[%s1507_s2] sm:$0xff] (!%p406_p10)   ;;  %v1132_v4 = vld [vmem:[%s1507_s2 + $0x8] sm:$0xff] (!%p406_p10)   ;;  %s1224_s2 = smov (!%p406_p10), [#allocation2]  }
  0x1c   : > { %1045 = vmatprep.subr.bf16.mxu1 %v1221_v1  ;;  %1036 = vmatpush3.bf16.msra.mxu0 %v1131_v3  ;;  %s1363_s30 = scalar_select %p463_p11, %s1211_s24, 1 }
  0x1d   : > { %1037 = vmatprep.subr.bf16.mxu0 %v1221_v1  ;;  %v1001_v12 = vld [vmem:[%s1510_s3] ss:$0 sm:$0xff]  ;;  %s1145_s3 = sshll.u32 %s1224_s2, 4  ;;  %s1146_s3 = int_to_ptr.vmem [resolvable:$false] %s1145_s3 }
  0x1e   : > { %s1370_s18 = sshll.u32 %s1363_s30, 2  ;;  %s476_s20 = scalar_lea.vmem %s1494_s8, %s1363_s30 }
  0x1f   : > { %1046 = vmatpush3.bf16.msra.mxu1 %v1130_v2  ;;  %s473_s27 = scalar_lea.vmem %s1508_s1, %s1370_s18  ;;  %s469_s17 = scalar_lea.vmem %s1509_s0, %s1370_s18  ;;  %v1010_v25 = vld [vmem:[%s476_s20] ss:$0 sm:$0xff] }
  0x20   : > { %1057 = vmatprep.subr.bf16.mxu1 %v1221_v1  ;;  %v486_v5 = vld [vmem:[%s473_s27] sm:$0xf]  ;;  %1038 = vmatpush3.bf16.msra.mxu0 %v1132_v4  ;;  %s852_s0 = scalar_lea.sflag [#allocation3], %s460_s28  ;;  %s1147_s4 = scalar_lea.vmem %s1146_s3, 128 }
  0x21   : > { %v1382_v6 = vld [vmem:[%s469_s17] sm:$0xf]  ;;  %1051 = vmatprep.subr.bf16.mxu0 %v1221_v1 }
  0x22   : > { %1048 = vmatmul.mubr.msk.bf16.vlgmr.msra.gmra.mrb[0].mxu1 %vm510_vm1, %v486_v5  ;;  %v809_v49 = vunpack.c.l.bf16 %v1382_v6 }
  0x23   : > { %1059 = vmatprep.mubr.msk.bf16.mxu1 %vm1222_vm0, %v1221_v1  ;;  %1040 = vmatmul.mubr.msk.bf16.vlgmr.msra.gmra.mrb[0].mxu0 %vm510_vm1, %v1382_v6 }
  0x24   : > { %1053 = vmatprep.mubr.msk.bf16.mxu0 %vm1222_vm0, %v1221_v1 }
  0xf5   : > { %v614_v8 = vpop.f32.mrb[0].mxu1 }
  0xf6   : > { %v615_v9 = vadd.f32 %v1005_v7, %v614_v8  ;;  %v1049_v10 = vpop.f32.mrb[1].mxu1  ;;  %v548_v13 = vpop.f32.mrb[0].mxu0 }
  0xf7   : > { %v617_v11 = vpop.f32.mrb[2].mxu1  ;;  %v1041_v16 = vpop.f32.mrb[1].mxu0  ;;  %v549_v19 = vadd.f32 %v1001_v12, %v548_v13 }
  0xf8   : > { %v621_v14 = vpack.c.bf16 %v615_v9, %v615_v9  ;;  %v1050_v15 = vpop.f32.mrb[3].mxu1  ;;  %v551_v17 = vpop.f32.mrb[2].mxu0 }
  0xf9   : > { %v1042_v20 = vpop.f32.mrb[3].mxu0  ;;  %v620_v21 = vpack.c.bf16 %v549_v19, %v549_v19 }
  0xfa   : > { %v626_v18 = vsel %vm510_vm1, %v621_v14, 0  ;;  %693 = vrot.lane.b32.xlu1 %v621_v14, %s1223_s14  ;;  %s1415_s14 = sshll.u32 %s460_s28, 2 }
  0xfb   : > { %1052 = vmatpush3.bf16.xpose.msra.mxu0 %v626_v18  ;;  %s462_s17 = scalar_lea.vmem [#allocation2], %s1415_s14  ;;  %s1019_s14 = sshll.u32 %s1211_s24, 6 }
  0xfc   : > { %1063 = vmatprep.subr.bf16.mxu0 %v1221_v1  ;;  %s869_s19 = sshll.u32 %s462_s17, 4  ;;  %s1433_s27 = scalar_lea.hbm %s1498_s12, %s1019_s14  ;;  %s870_s19 = int_to_ptr.vmem [resolvable:$true] %s869_s19 }
  0xfd   : > { %s1141_s1 = scalar_lea.vmem %s870_s19, 64  ;;  %p1148_p1 = scmp.lt.s32.totalorder %s870_s19, %s1146_s3 }
  0xfe   : > { %p1142_p12 = scmp.ne.s32.totalorder %s870_s19, %s1141_s1  ;;  %p1149_p2 = scmp.lt.s32.totalorder %s1147_s4, %s1141_s1 }
 0x100   : > { %p1143_p13 = pnand %p1142_p12, %p1330_p4  ;;  %p1150_p3 = por %p1149_p2, %p1148_p1 }
 0x102   : > { %1054 = vmatmul.mubr.msk.bf16.vlgmr.msra.gmra.mrb[4].mxu0 %vm510_vm1, %v620_v21  ;;  %p1144_p0 = pneg %p1143_p13 }
 0x103   : > { %1067 = vmatprep.mubr.msk.bf16.mxu0 %vm1222_vm0, %v1221_v1  ;;  %1064 = vmatpush3.bf16.msra.mxu0 %v1133_v37 }
 0x104   : > { %1065 = vmatprep.subr.bf16.mxu0 %v1221_v1  ;;  %p1151_p5 = pnand %p1150_p3, %p1144_p0 }
 0x107   : > { %1066 = vmatpush3.bf16.msra.mxu0 %v1134_v42 }
 0x16c   : > { %v694_v22 = vpop.permute.xlu1 %693 }
 0x16d   : > { %v700_v23 = vsel %vm698_vm2, %v694_v22, 0 }
 0x16e   : > { %1058 = vmatpush3.bf16.msra.mxu1 %v700_v23 }
 0x1d5   : > { %v662_v24 = vpop.f32.mrb[4].mxu0 }
 0x1d6   : > { %v668_v26 = vmul.f32 0.17677669, %v662_v24  ;;  %v1055_v27 = vpop.f32.mrb[5].mxu0 }
 0x1d7   : > { %v665_v28 = vpop.f32.mrb[6].mxu0 }
 0x1d8   : > { %v1056_v29 = vpop.f32.mrb[7].mxu0  ;;  %v676_v30 = vadd.f32 %v1010_v25, %v668_v26 }
 0x1da   : > { %v678_v31 = vsel %vm677_vm3, %v676_v30, -inf }
 0x1db   : > { %679 = vmax.xlane.f32.xlu0 %v678_v31 }
 0x268   : > { %v680_v32 = vpop.xlane.xlu0 %679 }
 0x269   : > { %v681_v33 = vsub.f32 %v676_v30, %v680_v32 }
 0x26b   : > { %v682_v34 = vmul.f32 1.442695, %v681_v33 }
 0x26d   : > { %1135 = vpow2.f32 %v682_v34 }
 0x277   : > { %v1136_v35 = vpop.eup %1135 }
 0x278   : > { %v684_v36 = vsel %vm677_vm3, %v1136_v35, 0.0 }
 0x279   : > { %685 = vadd.xlane.f32.xlu0 %v684_v36 }
 0x306   : > { %v686_v38 = vpop.xlane.xlu0 %685 }
 0x307   : > { %1137 = vrcp.f32 %v686_v38 }
 0x311   : > { %v1138_v39 = vpop.eup %1137 }
 0x312   : > { %v688_v40 = vmul.f32 %v1138_v39, %v1136_v35 }
 0x314   : > { %v689_v41 = vpack.c.bf16 %v688_v40, %v688_v40 }
 0x316   : > { %1060 = vmatmul.mubr.msk.bf16.vlgmr.msra.gmra.mrb[4].mxu1 %vm677_vm3, %v689_v41  ;;  %691 = vst.msk [vmem:[%s462_s17] sm:$0xf] %vm690_vm4, %v689_v41 }
 0x3e9   : > { %v736_v43 = vpop.f32.mrb[4].mxu1 }
 0x3ea   : > { %v742_v44 = vpack.c.bf16 %v736_v43, %v736_v43  ;;  %v1061_v45 = vpop.f32.mrb[5].mxu1 }
 0x3eb   : > { %v739_v46 = vpop.f32.mrb[6].mxu1 }
 0x3ec   : > { %v1062_v47 = vpop.f32.mrb[7].mxu1  ;;  %1068 = vmatmul.mubr.msk.bf16.vlgmr.msra.gmra.mrb[8].mxu0 %vm510_vm1, %v742_v44 }
 0x4bf   : > { %v803_v50 = vpop.f32.mrb[8].mxu0 }
 0x4c0   : > { %v804_v51 = vadd.f32 %v1012_v48, %v803_v50  ;;  %v1069_v52 = vpop.f32.mrb[9].mxu0 }
 0x4c1   : > { %v806_v53 = vpop.f32.mrb[10].mxu0 }
 0x4c2   : > { %v1070_v54 = vpop.f32.mrb[11].mxu0  ;;  %v810_v55 = vadd.f32 %v809_v49, %v804_v51 }
 0x4c4   : > { %v813_v56 = vsel %vm510_vm1, %v810_v55, 0.0 }
 0x4c5   : > { %814 = vadd.xlane.f32.xlu1 %v813_v56 }
 0x552   : > { %v815_v57 = vpop.xlane.xlu1 %814 }
 0x553   : > { %v817_v58 = vmul.f32 0.03125, %v815_v57 }
 0x555   : > { %v818_v59 = vsub.f32 %v810_v55, %v817_v58 }
 0x557   : > { %v819_v60 = vmul.f32 %v818_v59, %v818_v59 }
 0x559   : > { %v820_v61 = vsel %vm510_vm1, %v819_v60, 0.0 }
 0x55a   : > { %821 = vadd.xlane.f32.xlu0 %v820_v61 }
 0x55b   : > { %1154 = shalt.err (!%p1151_p5)
}
 0x55c   : > { %s1155_s24 = scalar_lea.hbm %s1433_s27, 64  ;;  %s1159_s2 = scalar_lea.hbm %s1498_s12, 128 }
 0x55d   : > { %p1156_p6 = scmp.ne.s32.totalorder %s1433_s27, %s1155_s24  ;;  %p1160_p10 = scmp.lt.u32.totalorder %s1433_s27, %s1498_s12 }
 0x55e   : > { %p1161_p11 = scmp.lt.u32.totalorder %s1159_s2, %s1155_s24  ;;  %p1163_p13 = scmp.lt.u32.totalorder %s1155_s24, %s1433_s27 }
 0x55f   : > { %p1157_p7 = pnand %p1156_p6, %p1330_p4 }
 0x560   : > { %p1162_p12 = por %p1161_p11, %p1160_p10 }
 0x561   : > { %p1158_p9 = pneg %p1157_p7 }
 0x562   : > { %p1164_p0 = por %p1163_p13, %p1162_p12 }
 0x564   : > { %p1165_p1 = pnand %p1164_p0, %p1158_p9 }
 0x566   : > { %1168 = shalt.err (!%p1165_p1)
}
 0x567   : > { %1071 = dma.vmem_to_hbm [thread:$0]  (%p1330_p4), %s870_s19, 64, %s1433_s27, %s852_s0   ;;  %v1016_v2 = vld [vmem:[%s1495_s9] ss:$0 sm:$0xff]  ;;  %vm842_vm5 = vcmask 257024  }
 0x568   : > { %v1017_v4 = vld [vmem:[%s1496_s10] ss:$0 sm:$0xff]  ;;  %s483_s0 = scalar_lea.vmem %s1497_s11, %s1370_s18 }
 0x5e7   : > { %v822_v62 = vpop.xlane.xlu0 %821 }
 0x5e8   : > { %v823_v63 = vmul.f32 0.03125, %v822_v62 }
 0x5ea   : > { %v824_v0 = vadd.f32 1e-05, %v823_v63 }
 0x5ec   : > { %1139 = vrsqrt.f32 %v824_v0 }
 0x5f6   : > { %v1140_v1 = vpop.eup %1139 }
 0x5f7   : > { %v826_v3 = vmul.f32 %v1140_v1, %v818_v59 }
 0x5f9   : > { %v833_v5 = vmul.f32 %v1016_v2, %v826_v3 }
 0x5fb   : > { %v840_v6 = vadd.f32 %v1017_v4, %v833_v5 }
 0x5fd   : > { %v841_v7 = vpack.c.bf16 %v840_v6, %v840_v6 }
 0x5ff   : > { %843 = vst.msk [vmem:[%s483_s0] sm:$0xf] %vm842_vm5, %v841_v7 }
 0x600 PF: > { %p1077_p4 = scmp.ge.s32.totalorder %s1219_s26, 2  ;;  %s891_s19 = sand.u32 1, %s1199_s21  }
 0x601   : > { %s892_s27 = scalar_lea.sflag [#allocation3], %s891_s19 }
 0x602   : > { %p1074_p2 = pnand %p1077_p4, %p1337_p8 }
 0x604   : > { %1194 = dma.done.wait (!%p1074_p2), %s892_s27, 64  }
 0x605   : > { %1196 = vsyncadd (!%p1074_p2), %s892_s27, 4294967232  ;;  %s26_s26 = sadd.s32 1, %s1219_s26   ;;  %s1511_s21 = smov %s1203_s22 }
 0x606   : > { %p23_p3 = scmp.ge.s32.totalorder %s26_s26, 4   ;;  %s1512_s22 = smov %s1207_s23 }
 0x607   : > { %s1513_s23 = smov %s1343_s16  ;;  %s1514_s24 = smov %s1215_s25 }
 0x608   : > { %s1515_s25 = smov %s1517_s29  ;;  %25 = sbr.rel (!%p23_p3) target bundleno = 10 (0xa), region = 117 }
 0x60f   :  { %897 = vsyncpa [#allocation3], 1 }
 0x610   :  { %899 = vsyncpa [#allocation3 + $0x1], 1 }

// kernel: attention_transformer_forward.21
= control target key start
LH: loop header
LB: loop body
LE: loop exit
PB: predicated region body
PF: predicated region fallthrough
CT: control target
= control target key end

     0   :  { %v136_v0 = vmov 0.0   ;;  %vm137_vm0 = vmmov 0   ;;  %vm46_vm1 = vcmask 261120   ;;  %s176_s1 = inlined_call_operand.vmem [shape: bf16[32,128], index: 1, kind: input, shape index: {}]   ;;  %s177_s0 = inlined_call_operand.vmem [shape: bf16[16,32], index: 0, kind: input, shape index: {}]   ;;  %s178_s2 = inlined_call_operand.vmem [shape: f32[1,128], index: 2, kind: input, shape index: {}]   ;;  %s179_s3 = inlined_call_operand.vmem [shape: f32[16,128], index: 3, kind: output, shape index: {}]  }
   0x1   :  { %123 = vmatprep.subr.bf16.mxu0 %v136_v0  ;;  %v133_v1 = vld [vmem:[%s176_s1] sm:$0xff]   ;;  %127 = vmatprep.mubr.msk.bf16.mxu0 %vm137_vm0, %v136_v0  ;;  %v134_v2 = vld [vmem:[%s176_s1 + $0x8] sm:$0xff]  }
   0x2   :  { %124 = vmatpush3.bf16.msra.mxu0 %v133_v1  ;;  %v135_v3 = vld [vmem:[%s177_s0] sm:$0xff]  }
   0x3   :  { %125 = vmatprep.subr.bf16.mxu0 %v136_v0  ;;  %v119_v4 = vld [vmem:[%s178_s2] ss:$0 sm:$0xff] }
   0x6   :  { %126 = vmatpush3.bf16.msra.mxu0 %v134_v2 }
   0x9   :  { %128 = vmatmul.mubr.msk.bf16.vlgmr.msra.gmra.mrb[0].mxu0 %vm46_vm1, %v135_v3 }
  0xdc   :  { %v84_v5 = vpop.f32.mrb[0].mxu0 }
  0xdd   :  { %v107_v6 = vadd.f32 %v119_v4, %v84_v5  ;;  %v129_v7 = vpop.f32.mrb[1].mxu0 }
  0xde   :  { %v87_v8 = vpop.f32.mrb[2].mxu0 }
  0xdf   :  { %109 = vst [vmem:[%s179_s3] sm:$0xff] %v107_v6  ;;  %v108_v9 = vadd.f32 %v119_v4, %v87_v8  ;;  %v130_v10 = vpop.f32.mrb[3].mxu0 }
  0xe1   :  { %110 = vst [vmem:[%s179_s3 + $0x8] sm:$0xff] %v108_v9 }

</bundles_post_ra>
